<compile_context>
chip_gen: v7x
topology: tpu7x:2x2x1
jax: 0.10.0
libtpu: 0.0.40
codegen_flags: <defaults>
</compile_context>

<pallas_src>
import functools
import math

import jax
import jax.numpy as jnp
from jax import lax
from jax.experimental import pallas as pl
from jax.experimental.pallas import tpu as pltpu


def _dot_t(a, b):
    """a @ b.T — contract the last dim of both operands (no host transpose)."""
    return lax.dot_general(a, b, (((1,), (1,)), ((), ())),
                           preferred_element_type=jnp.float32)


def _ctrnn_kernel(num_steps,
                  scalars_ref,    # SMEM (2,): [alpha, transform_increment_coeff]
                  x_ref,          # VMEM (1, B, In)  -- timestep slice
                  w_in_ref,       # (H, In)
                  b_in_ref,       # (1, H)
                  w_hh_ref,       # (H, H)
                  b_hh_ref,       # (1, H)
                  transform_ref,  # (H*H, H)
                  eye_flat_ref,   # (1, H*H)  identity, flattened
                  tile_ref,       # (H*H, H)  lane-tiling 0/1 matrix
                  group_ref,      # (H, H*H)  group-sum 0/1 matrix
                  h0_ref,         # (B, H)    initial hidden
                  out_ref,        # (1, B, H) per-timestep output
                  hfin_ref,       # (B, H)    final hidden
                  h_scr,          # VMEM (B, H)   f32 carried hidden
                  th_scr):        # VMEM (B, H*H) f32 carried transform state
    t = pl.program_id(0)
    alpha = scalars_ref[0]
    coeff = scalars_ref[1]

    @pl.when(t == 0)
    def _init():
        h_scr[...] = h0_ref[...].astype(jnp.float32)
        th_scr[...] = jnp.broadcast_to(eye_flat_ref[...], th_scr.shape)

    x_t = x_ref[0].astype(jnp.float32)      # (B, In)
    h = h_scr[...]
    th = th_scr[...]

    for _ in range(num_steps):              # static unroll (default 1)
        # input projection: x_t @ W_in.T + b_in
        ip = _dot_t(x_t, w_in_ref[...]) + b_in_ref[...]          # (B, H)
        # per-sample transform matrix, flattened: TM[b, i*H+j]
        tm = _dot_t(ip, transform_ref[...])                      # (B, H*H)
        # leaky update of the per-sample transform state
        th = th * (1.0 - coeff) + tm * coeff
        # batched mat-vec TH[b] @ ip[b] without 3-D reshapes:
        ip_tiled = _dot_t(ip, tile_ref[...])                     # (B, H*H), = tile(ip)
        ti = _dot_t(th * ip_tiled, group_ref[...])               # (B, H)
        # hidden-to-hidden, relu, leaky integration
        hh = _dot_t(h, w_hh_ref[...]) + b_hh_ref[...]            # (B, H)
        h_new = jnp.maximum(ti + hh, 0.0)
        h = h * (1.0 - alpha) + h_new * alpha

    h_scr[...] = h
    th_scr[...] = th
    out_ref[0] = h.astype(out_ref.dtype)
    hfin_ref[...] = h.astype(hfin_ref.dtype)


def transform_ctrnn_forward(x, w_in, b_in, w_hh, b_hh, transform,
                            alpha, coeff, hidden0=None, num_steps=1):
    """Pallas implementation of TransformCTRNN.forward.

    x: (seq_len, batch, input_size); weights in PyTorch layout (out, in).
    Returns (output (seq_len, batch, H), final hidden (batch, H)).
    """
    seq_len, batch, in_size = x.shape
    hidden = w_in.shape[0]
    hsq = hidden * hidden
    assert transform.shape == (hsq, hidden)

    if hidden0 is None:
        hidden0 = jnp.zeros((batch, hidden), jnp.float32)

    scalars = jnp.asarray([alpha, coeff], jnp.float32)
    b_in2 = b_in.reshape(1, hidden).astype(jnp.float32)
    b_hh2 = b_hh.reshape(1, hidden).astype(jnp.float32)
    eye = jnp.eye(hidden, dtype=jnp.float32)
    eye_flat = eye.reshape(1, hsq)
    tile_mat = jnp.tile(eye, (hidden, 1))         # (H*H, H): [m,k]=1 iff m%H==k
    group_mat = jnp.repeat(eye, hidden, axis=1)   # (H, H*H): [i,m]=1 iff m//H==i

    flops_step = 2 * batch * (in_size * hidden + 3 * hsq * hidden + hidden * hidden)
    cost = pl.CostEstimate(
        flops=int(seq_len * num_steps * flops_step),
        transcendentals=0,
        bytes_accessed=int(4 * (x.size + w_in.size + w_hh.size + transform.size
                                + tile_mat.size + group_mat.size + eye_flat.size
                                + b_in2.size + b_hh2.size + hidden0.size
                                + seq_len * batch * hidden + batch * hidden)),
    )

    const2 = lambda t: (0, 0)
    grid_spec = pltpu.PrefetchScalarGridSpec(
        num_scalar_prefetch=0,
        grid=(seq_len,),
        in_specs=[
            pl.BlockSpec(memory_space=pltpu.MemorySpace.SMEM),          # scalars
            pl.BlockSpec((1, batch, in_size), lambda t: (t, 0, 0)),     # x[t]
            pl.BlockSpec((hidden, in_size), const2),                    # W_in
            pl.BlockSpec((1, hidden), const2),                          # b_in
            pl.BlockSpec((hidden, hidden), const2),                     # W_h2h
            pl.BlockSpec((1, hidden), const2),                          # b_h2h
            pl.BlockSpec((hsq, hidden), const2),                        # transform
            pl.BlockSpec((1, hsq), const2),                             # eye_flat
            pl.BlockSpec((hsq, hidden), const2),                        # tile_mat
            pl.BlockSpec((hidden, hsq), const2),                        # group_mat
            pl.BlockSpec((batch, hidden), const2),                      # h0
        ],
        out_specs=[
            pl.BlockSpec((1, batch, hidden), lambda t: (t, 0, 0)),      # output[t]
            pl.BlockSpec((batch, hidden), const2),                      # final hidden
        ],
        scratch_shapes=[
            pltpu.VMEM((batch, hidden), jnp.float32),
            pltpu.VMEM((batch, hsq), jnp.float32),
        ],
    )

    out, h_final = pl.pallas_call(
        functools.partial(_ctrnn_kernel, num_steps),
        out_shape=(jax.ShapeDtypeStruct((seq_len, batch, hidden), x.dtype),
                   jax.ShapeDtypeStruct((batch, hidden), x.dtype)),
        grid_spec=grid_spec,
        compiler_params=pltpu.CompilerParams(
            dimension_semantics=("arbitrary",)),    # sequential recurrence
        cost_estimate=cost,
    )(scalars, x, w_in, b_in2, w_hh, b_hh2, transform,
      eye_flat, tile_mat, group_mat, hidden0)
    return out, h_final


if __name__ == "__main__":
    key = jax.random.PRNGKey(0)
    k_x, k_win, k_bin, k_whh, k_bhh, k_tr = jax.random.split(key, 6)

    seq_len, batch, input_size, hidden_size = 8, 4, 16, 32
    dt, tau = 20.0, 100.0
    alpha = dt / tau                 # 0.2
    coeff = alpha                    # transform_increment_coeff default (== alpha)

    x = jax.random.normal(k_x, (seq_len, batch, input_size), jnp.float32)

    bound_in = 1.0 / math.sqrt(input_size)
    w_in = jax.random.uniform(k_win, (hidden_size, input_size), jnp.float32,
                              -bound_in, bound_in)
    b_in = jax.random.uniform(k_bin, (hidden_size,), jnp.float32,
                              -bound_in, bound_in)
    bound_hh = 1.0 / math.sqrt(hidden_size)
    w_hh = jax.random.uniform(k_whh, (hidden_size, hidden_size), jnp.float32,
                              -bound_hh, bound_hh)
    b_hh = jax.random.uniform(k_bhh, (hidden_size,), jnp.float32,
                              -bound_hh, bound_hh)
    transform = jax.random.normal(
        k_tr, (hidden_size * hidden_size, hidden_size), jnp.float32)

    out, h_final = transform_ctrnn_forward(x, w_in, b_in, w_hh, b_hh, transform,
                                           alpha, coeff)
    out = jax.block_until_ready(out)
    h_final = jax.block_until_ready(h_final)

    # Pure-JAX reference mirroring the PyTorch forward exactly.
    def reference(x, w_in, b_in, w_hh, b_hh, transform, alpha, coeff, num_steps=1):
        S, B, _ = x.shape
        H = w_in.shape[0]
        h = jnp.zeros((B, H), jnp.float32)
        th = jnp.broadcast_to(jnp.eye(H, dtype=jnp.float32), (B, H, H))
        outs = []
        for t in range(S):
            for _ in range(num_steps):
                ip = x[t] @ w_in.T + b_in
                tm = (ip @ transform.T).reshape(B, H, H)
                th = th * (1.0 - coeff) + tm * coeff
                ti = jnp.einsum('bij,bj->bi', th, ip)
                hh = h @ w_hh.T + b_hh
                h_new = jnp.maximum(ti + hh, 0.0)
                h = h * (1.0 - alpha) + h_new * alpha
            outs.append(h)
        return jnp.stack(outs, 0), h

    ref_out, ref_h = reference(x, w_in, b_in, w_hh, b_hh, transform, alpha, coeff)

    assert out.shape == (seq_len, batch, hidden_size)
    assert h_final.shape == (batch, hidden_size)
    assert jnp.allclose(out, ref_out, atol=1e-3, rtol=1e-3), "output mismatch"
    assert jnp.allclose(h_final, ref_h, atol=1e-3, rtol=1e-3), "final hidden mismatch"

    print("KERNEL_OK")
</pallas_src>

<mosaic_0001>
module attributes {stable_mosaic.version = 11 : i64} {
  func.func @_ctrnn_kernel(%arg0: i32, %arg1: memref<2xf32, #tpu.memory_space<smem>>, %arg2: memref<1x4x16xf32, #tpu.memory_space<vmem>>, %arg3: memref<32x16xf32, #tpu.memory_space<vmem>>, %arg4: memref<1x32xf32, #tpu.memory_space<vmem>>, %arg5: memref<32x32xf32, #tpu.memory_space<vmem>>, %arg6: memref<1x32xf32, #tpu.memory_space<vmem>>, %arg7: memref<1024x32xf32, #tpu.memory_space<vmem>>, %arg8: memref<1x1024xf32, #tpu.memory_space<vmem>>, %arg9: memref<1024x32xf32, #tpu.memory_space<vmem>>, %arg10: memref<32x1024xf32, #tpu.memory_space<vmem>>, %arg11: memref<4x32xf32, #tpu.memory_space<vmem>>, %arg12: memref<1x4x32xf32, #tpu.memory_space<vmem>>, %arg13: memref<4x32xf32, #tpu.memory_space<vmem>>, %arg14: memref<4x32xf32, #tpu.memory_space<vmem>>, %arg15: memref<4x1024xf32, #tpu.memory_space<vmem>>) attributes {dimension_semantics = [#tpu.dimension_semantics<arbitrary>], iteration_bounds = array<i64: 8>, scalar_prefetch = 0 : i64, scratch_operands = 2 : i64, tpu.core_type = #tpu.core_type<tc>, window_params = [{transform_indices = @transform_0, window_bounds = array<i64: 2>}, {transform_indices = @transform_1, window_bounds = array<i64: 1, 4, 16>}, {pipeline_mode = #tpu.pipeline_mode<synchronous>, transform_indices = @transform_2, window_bounds = array<i64: 32, 16>}, {pipeline_mode = #tpu.pipeline_mode<synchronous>, transform_indices = @transform_3, window_bounds = array<i64: 1, 32>}, {pipeline_mode = #tpu.pipeline_mode<synchronous>, transform_indices = @transform_4, window_bounds = array<i64: 32, 32>}, {pipeline_mode = #tpu.pipeline_mode<synchronous>, transform_indices = @transform_5, window_bounds = array<i64: 1, 32>}, {pipeline_mode = #tpu.pipeline_mode<synchronous>, transform_indices = @transform_6, window_bounds = array<i64: 1024, 32>}, {pipeline_mode = #tpu.pipeline_mode<synchronous>, transform_indices = @transform_7, window_bounds = array<i64: 1, 1024>}, {pipeline_mode = #tpu.pipeline_mode<synchronous>, transform_indices = @transform_8, window_bounds = array<i64: 1024, 32>}, {pipeline_mode = #tpu.pipeline_mode<synchronous>, transform_indices = @transform_9, window_bounds = array<i64: 32, 1024>}, {pipeline_mode = #tpu.pipeline_mode<synchronous>, transform_indices = @transform_10, window_bounds = array<i64: 4, 32>}, {transform_indices = @transform_11, window_bounds = array<i64: 1, 4, 32>}, {pipeline_mode = #tpu.pipeline_mode<synchronous>, transform_indices = @transform_12, window_bounds = array<i64: 4, 32>}]} {
    %c0 = arith.constant 0 : index
    %0 = memref.load %arg1[%c0] : memref<2xf32, #tpu.memory_space<smem>>
    %c1 = arith.constant 1 : index
    %1 = memref.load %arg1[%c1] : memref<2xf32, #tpu.memory_space<smem>>
    %c0_i32 = arith.constant 0 : i32
    %2 = arith.cmpi eq, %arg0, %c0_i32 : i32
    %3 = arith.extui %2 : i1 to i32
    %c0_i32_0 = arith.constant 0 : i32
    %4 = arith.cmpi ne, %3, %c0_i32_0 : i32
    scf.if %4 {
      %c0_38 = arith.constant 0 : index
      %c0_39 = arith.constant 0 : index
      %47 = vector.load %arg11[%c0_38, %c0_39] : memref<4x32xf32, #tpu.memory_space<vmem>>, vector<4x32xf32>
      %c0_40 = arith.constant 0 : index
      %c0_41 = arith.constant 0 : index
      %48 = vector.load %arg14[%c0_40, %c0_41] : memref<4x32xf32, #tpu.memory_space<vmem>>, vector<4x32xf32>
      tpu.vector_store %arg14[%c0_40, %c0_41], %47 {strides = array<i32>} : memref<4x32xf32, #tpu.memory_space<vmem>>, vector<4x32xf32>,
      %c0_42 = arith.constant 0 : index
      %c0_43 = arith.constant 0 : index
      %49 = vector.load %arg8[%c0_42, %c0_43] : memref<1x1024xf32, #tpu.memory_space<vmem>>, vector<1x1024xf32>
      %50 = vector.shape_cast %49 : vector<1x1024xf32> to vector<1x1024xf32>
      %51 = vector.broadcast %50 : vector<1x1024xf32> to vector<4x1024xf32>
      %c0_44 = arith.constant 0 : index
      %c0_45 = arith.constant 0 : index
      %52 = vector.load %arg15[%c0_44, %c0_45] : memref<4x1024xf32, #tpu.memory_space<vmem>>, vector<4x1024xf32>
      tpu.vector_store %arg15[%c0_44, %c0_45], %51 {strides = array<i32>} : memref<4x1024xf32, #tpu.memory_space<vmem>>, vector<4x1024xf32>,
    } else {
    }
    %c0_1 = arith.constant 0 : index
    %c0_2 = arith.constant 0 : index
    %c0_3 = arith.constant 0 : index
    %5 = vector.load %arg2[%c0_1, %c0_2, %c0_3] : memref<1x4x16xf32, #tpu.memory_space<vmem>>, vector<1x4x16xf32>
    %6 = vector.shape_cast %5 : vector<1x4x16xf32> to vector<4x16xf32>
    %c0_4 = arith.constant 0 : index
    %c0_5 = arith.constant 0 : index
    %7 = vector.load %arg14[%c0_4, %c0_5] : memref<4x32xf32, #tpu.memory_space<vmem>>, vector<4x32xf32>
    %c0_6 = arith.constant 0 : index
    %c0_7 = arith.constant 0 : index
    %8 = vector.load %arg15[%c0_6, %c0_7] : memref<4x1024xf32, #tpu.memory_space<vmem>>, vector<4x1024xf32>
    %c0_8 = arith.constant 0 : index
    %c0_9 = arith.constant 0 : index
    %9 = vector.load %arg3[%c0_8, %c0_9] : memref<32x16xf32, #tpu.memory_space<vmem>>, vector<32x16xf32>
    %cst = arith.constant dense<0.000000e+00> : vector<4x32xf32>
    %10 = tpu.matmul %6, %9, %cst {dimension_numbers = #tpu.dot_dimension_numbers<[1], [1], [0], [0], [0, 0, 1, 0], [], []>} : vector<4x16xf32>, vector<32x16xf32>, vector<4x32xf32> -> vector<4x32xf32>
    %c0_10 = arith.constant 0 : index
    %c0_11 = arith.constant 0 : index
    %11 = vector.load %arg4[%c0_10, %c0_11] : memref<1x32xf32, #tpu.memory_space<vmem>>, vector<1x32xf32>
    %12 = vector.broadcast %11 : vector<1x32xf32> to vector<4x32xf32>
    %13 = arith.addf %10, %12 : vector<4x32xf32>
    %c0_12 = arith.constant 0 : index
    %c0_13 = arith.constant 0 : index
    %14 = vector.load %arg7[%c0_12, %c0_13] : memref<1024x32xf32, #tpu.memory_space<vmem>>, vector<1024x32xf32>
    %cst_14 = arith.constant dense<0.000000e+00> : vector<4x1024xf32>
    %15 = tpu.matmul %13, %14, %cst_14 {dimension_numbers = #tpu.dot_dimension_numbers<[1], [1], [0], [0], [0, 0, 1, 0], [], []>} : vector<4x32xf32>, vector<1024x32xf32>, vector<4x1024xf32> -> vector<4x1024xf32>
    %cst_15 = arith.constant 1.000000e+00 : f32
    %16 = arith.subf %cst_15, %1 : f32
    %17 = vector.broadcast %16 : f32 to vector<4x1024xf32>
    %18 = arith.mulf %8, %17 : vector<4x1024xf32>
    %19 = vector.broadcast %1 : f32 to vector<4x1024xf32>
    %20 = arith.mulf %15, %19 : vector<4x1024xf32>
    %21 = arith.addf %18, %20 : vector<4x1024xf32>
    %c0_16 = arith.constant 0 : index
    %c0_17 = arith.constant 0 : index
    %22 = vector.load %arg9[%c0_16, %c0_17] : memref<1024x32xf32, #tpu.memory_space<vmem>>, vector<1024x32xf32>
    %cst_18 = arith.constant dense<0.000000e+00> : vector<4x1024xf32>
    %23 = tpu.matmul %13, %22, %cst_18 {dimension_numbers = #tpu.dot_dimension_numbers<[1], [1], [0], [0], [0, 0, 1, 0], [], []>} : vector<4x32xf32>, vector<1024x32xf32>, vector<4x1024xf32> -> vector<4x1024xf32>
    %24 = arith.mulf %21, %23 : vector<4x1024xf32>
    %c0_19 = arith.constant 0 : index
    %c0_20 = arith.constant 0 : index
    %25 = vector.load %arg10[%c0_19, %c0_20] : memref<32x1024xf32, #tpu.memory_space<vmem>>, vector<32x1024xf32>
    %cst_21 = arith.constant dense<0.000000e+00> : vector<4x32xf32>
    %26 = tpu.matmul %24, %25, %cst_21 {dimension_numbers = #tpu.dot_dimension_numbers<[1], [1], [0], [0], [0, 0, 1, 0], [], []>} : vector<4x1024xf32>, vector<32x1024xf32>, vector<4x32xf32> -> vector<4x32xf32>
    %c0_22 = arith.constant 0 : index
    %c0_23 = arith.constant 0 : index
    %27 = vector.load %arg5[%c0_22, %c0_23] : memref<32x32xf32, #tpu.memory_space<vmem>>, vector<32x32xf32>
    %cst_24 = arith.constant dense<0.000000e+00> : vector<4x32xf32>
    %28 = tpu.matmul %7, %27, %cst_24 {dimension_numbers = #tpu.dot_dimension_numbers<[1], [1], [0], [0], [0, 0, 1, 0], [], []>} : vector<4x32xf32>, vector<32x32xf32>, vector<4x32xf32> -> vector<4x32xf32>
    %c0_25 = arith.constant 0 : index
    %c0_26 = arith.constant 0 : index
    %29 = vector.load %arg6[%c0_25, %c0_26] : memref<1x32xf32, #tpu.memory_space<vmem>>, vector<1x32xf32>
    %30 = vector.broadcast %29 : vector<1x32xf32> to vector<4x32xf32>
    %31 = arith.addf %28, %30 : vector<4x32xf32>
    %32 = arith.addf %26, %31 : vector<4x32xf32>
    %cst_27 = arith.constant 0.000000e+00 : f32
    %33 = vector.broadcast %cst_27 : f32 to vector<4x32xf32>
    %34 = arith.maximumf %32, %33 : vector<4x32xf32>
    %cst_28 = arith.constant 1.000000e+00 : f32
    %35 = arith.subf %cst_28, %0 : f32
    %36 = vector.broadcast %35 : f32 to vector<4x32xf32>
    %37 = arith.mulf %7, %36 : vector<4x32xf32>
    %38 = vector.broadcast %0 : f32 to vector<4x32xf32>
    %39 = arith.mulf %34, %38 : vector<4x32xf32>
    %40 = arith.addf %37, %39 : vector<4x32xf32>
    %c0_29 = arith.constant 0 : index
    %c0_30 = arith.constant 0 : index
    %41 = vector.load %arg14[%c0_29, %c0_30] : memref<4x32xf32, #tpu.memory_space<vmem>>, vector<4x32xf32>
    tpu.vector_store %arg14[%c0_29, %c0_30], %40 {strides = array<i32>} : memref<4x32xf32, #tpu.memory_space<vmem>>, vector<4x32xf32>,
    %c0_31 = arith.constant 0 : index
    %c0_32 = arith.constant 0 : index
    %42 = vector.load %arg15[%c0_31, %c0_32] : memref<4x1024xf32, #tpu.memory_space<vmem>>, vector<4x1024xf32>
    tpu.vector_store %arg15[%c0_31, %c0_32], %21 {strides = array<i32>} : memref<4x1024xf32, #tpu.memory_space<vmem>>, vector<4x1024xf32>,
    %c0_33 = arith.constant 0 : index
    %c0_34 = arith.constant 0 : index
    %c0_35 = arith.constant 0 : index
    %43 = vector.load %arg12[%c0_33, %c0_34, %c0_35] : memref<1x4x32xf32, #tpu.memory_space<vmem>>, vector<1x4x32xf32>
    %44 = vector.shape_cast %43 : vector<1x4x32xf32> to vector<4x32xf32>
    %45 = vector.shape_cast %40 : vector<4x32xf32> to vector<1x4x32xf32>
    tpu.vector_store %arg12[%c0_33, %c0_34, %c0_35], %45 {strides = array<i32>} : memref<1x4x32xf32, #tpu.memory_space<vmem>>, vector<1x4x32xf32>,
    %c0_36 = arith.constant 0 : index
    %c0_37 = arith.constant 0 : index
    %46 = vector.load %arg13[%c0_36, %c0_37] : memref<4x32xf32, #tpu.memory_space<vmem>>, vector<4x32xf32>
    tpu.vector_store %arg13[%c0_36, %c0_37], %40 {strides = array<i32>} : memref<4x32xf32, #tpu.memory_space<vmem>>, vector<4x32xf32>,
    return
  }
  func.func @transform_0(%arg0: i32) -> i32 {
    %c0_i32 = arith.constant 0 : i32
    %c0_i32_0 = arith.constant 0 : i32
    return %c0_i32 : i32
  }
  func.func @transform_1(%arg0: i32) -> (i32, i32, i32) {
    %c0_i32 = arith.constant 0 : i32
    %c0_i32_0 = arith.constant 0 : i32
    %c0_i32_1 = arith.constant 0 : i32
    return %arg0, %c0_i32, %c0_i32_0 : i32, i32, i32
  }
  func.func @transform_2(%arg0: i32) -> (i32, i32) {
    %c0_i32 = arith.constant 0 : i32
    %c0_i32_0 = arith.constant 0 : i32
    %c0_i32_1 = arith.constant 0 : i32
    return %c0_i32, %c0_i32_0 : i32, i32
  }
  func.func @transform_3(%arg0: i32) -> (i32, i32) {
    %c0_i32 = arith.constant 0 : i32
    %c0_i32_0 = arith.constant 0 : i32
    %c0_i32_1 = arith.constant 0 : i32
    return %c0_i32, %c0_i32_0 : i32, i32
  }
  func.func @transform_4(%arg0: i32) -> (i32, i32) {
    %c0_i32 = arith.constant 0 : i32
    %c0_i32_0 = arith.constant 0 : i32
    %c0_i32_1 = arith.constant 0 : i32
    return %c0_i32, %c0_i32_0 : i32, i32
  }
  func.func @transform_5(%arg0: i32) -> (i32, i32) {
    %c0_i32 = arith.constant 0 : i32
    %c0_i32_0 = arith.constant 0 : i32
    %c0_i32_1 = arith.constant 0 : i32
    return %c0_i32, %c0_i32_0 : i32, i32
  }
  func.func @transform_6(%arg0: i32) -> (i32, i32) {
    %c0_i32 = arith.constant 0 : i32
    %c0_i32_0 = arith.constant 0 : i32
    %c0_i32_1 = arith.constant 0 : i32
    return %c0_i32, %c0_i32_0 : i32, i32
  }
  func.func @transform_7(%arg0: i32) -> (i32, i32) {
    %c0_i32 = arith.constant 0 : i32
    %c0_i32_0 = arith.constant 0 : i32
    %c0_i32_1 = arith.constant 0 : i32
    return %c0_i32, %c0_i32_0 : i32, i32
  }
  func.func @transform_8(%arg0: i32) -> (i32, i32) {
    %c0_i32 = arith.constant 0 : i32
    %c0_i32_0 = arith.constant 0 : i32
    %c0_i32_1 = arith.constant 0 : i32
    return %c0_i32, %c0_i32_0 : i32, i32
  }
  func.func @transform_9(%arg0: i32) -> (i32, i32) {
    %c0_i32 = arith.constant 0 : i32
    %c0_i32_0 = arith.constant 0 : i32
    %c0_i32_1 = arith.constant 0 : i32
    return %c0_i32, %c0_i32_0 : i32, i32
  }
  func.func @transform_10(%arg0: i32) -> (i32, i32) {
    %c0_i32 = arith.constant 0 : i32
    %c0_i32_0 = arith.constant 0 : i32
    %c0_i32_1 = arith.constant 0 : i32
    return %c0_i32, %c0_i32_0 : i32, i32
  }
  func.func @transform_11(%arg0: i32) -> (i32, i32, i32) {
    %c0_i32 = arith.constant 0 : i32
    %c0_i32_0 = arith.constant 0 : i32
    %c0_i32_1 = arith.constant 0 : i32
    return %arg0, %c0_i32, %c0_i32_0 : i32, i32, i32
  }
  func.func @transform_12(%arg0: i32) -> (i32, i32) {
    %c0_i32 = arith.constant 0 : i32
    %c0_i32_0 = arith.constant 0 : i32
    %c0_i32_1 = arith.constant 0 : i32
    return %c0_i32, %c0_i32_0 : i32, i32
  }
}

</mosaic_0001>

<bundles_post_ra>
// kernel: tpu_custom_call.1
= control target key start
LH: loop header
LB: loop body
LE: loop exit
PB: predicated region body
PF: predicated region fallthrough
CT: control target
= control target key end

     0   :  { %s5451_s0 = inlined_call_operand.vmem [shape: f32[2], index: 0, kind: input, shape index: {}]   ;;  %s5452_s1 = inlined_call_operand.vmem [shape: f32[8,4,16], index: 1, kind: input, shape index: {}]   ;;  %s5453_s2 = inlined_call_operand.vmem [shape: f32[32,16], index: 2, kind: input, shape index: {}]   ;;  %s5454_s3 = inlined_call_operand.vmem [shape: f32[1,32], index: 3, kind: input, shape index: {}]   ;;  %s5455_s4 = inlined_call_operand.vmem [shape: f32[32,32], index: 4, kind: input, shape index: {}]   ;;  %s5456_s5 = inlined_call_operand.vmem [shape: f32[1,32], index: 5, kind: input, shape index: {}]   ;;  %s5457_s6 = inlined_call_operand.vmem [shape: f32[1024,32], index: 6, kind: input, shape index: {}]   ;;  %s5458_s7 = inlined_call_operand.vmem [shape: f32[1,1024], index: 7, kind: input, shape index: {}]   ;;  %s5459_s8 = inlined_call_operand.vmem [shape: f32[1024,32], index: 8, kind: input, shape index: {}]   ;;  %s5460_s9 = inlined_call_operand.vmem [shape: f32[32,1024], index: 9, kind: input, shape index: {}]   ;;  %s5461_s10 = inlined_call_operand.vmem [shape: f32[4,32], index: 10, kind: input, shape index: {}]   ;;  %s5462_s11 = inlined_call_operand.hbm [shape: f32[8,4,32], index: 11, kind: output, shape index: {0}]   ;;  %s5463_s12 = inlined_call_operand.hbm [shape: f32[4,32], index: 12, kind: output, shape index: {1}]  }
   0x1   :  { %5469 = sst [smem:[#allocation16_spill]] %s5451_s0 }
   0x2   :  { %5470 = sst [smem:[#allocation17_spill]] %s5452_s1 }
   0x3   :  { %5471 = sst [smem:[#allocation18_spill]] %s5453_s2 }
   0x4   :  { %18 = vsyncpa [#allocation6], 0 }
   0x5   :  { %19 = vsyncpa [#allocation5], 0 }
   0x6   :  { %21 = vsyncpa [#allocation5 + $0x1], 0 }
   0x7   :  { %22 = vsyncpa [#allocation9], 0  ;;  %s4053_s21 = smov 0   ;;  %s4055_s22 = smov 0  }
   0x8   :  { %s4057_s23 = smov 0   ;;  %s4059_s24 = smov 0  }
   0x9 LB: > { %5472 = sst [smem:[#allocation13_spill]] %s3976_s23  ;;  %s4074_s25 = sadd.s32 4294967295, %s3980_s24   ;;  %s3980_s24 = sphi %s4059_s24, %s5493_s24   ;;  %s3976_s23 = sphi %s4057_s23, %s5495_s23   ;;  %s3972_s22 = sphi %s4055_s22, %s5497_s22   ;;  %s3968_s21 = sphi %s4053_s21, %s5496_s21  }
   0xa   : > { %s2773_s26 = sadd.s32 4294967294, %s3980_s24   ;;  %s4078_s27 = sadd.s32 1, %s3980_s24  }
   0xb   : > { %5473 = sst [smem:[#allocation14_spill]] %s4078_s27  ;;  %s271_s28 = sadd.s32 1, %s3976_s23 }
   0xc   : > { %s268_s29 = ssub.s32 %s3980_s24, %s4078_s27  ;;  %p281_p0 = scmp.ne.s32.totalorder %s3976_s23, %s3972_s22 }
   0xd   : > { %p269_p1 = scmp.eq.s32.totalorder %s268_s29, 0  ;;  %p5464_p2 = scmp.eq.s32.totalorder %s4074_s25, 7 }
   0xe   : > { %p287_p3 = scmp.ne.s32.totalorder %s3972_s22, %s3968_s21  ;;  %p288_p4 = scmp.eq.s32.totalorder %s2773_s26, 7 }
   0xf   : > { %s4089_s30 = scalar_select %p269_p1, %s3976_s23, %s271_s28  }
  0x10   : > { %p4093_p5 = por %p5464_p2, %p281_p0  ;;  %p4097_p6 = por %p288_p4, %p287_p3 }
  0x11   : > { %5474 = sst [smem:[#allocation15_spill]] %s4089_s30  ;;  %p2774_p7 = scmp.ge.s32.totalorder %s3980_s24, 1 }
  0x12   : > { %p316_p8 = scmp.lt.s32.totalorder %s3980_s24, 9  ;;  %p3827_p10 = scmp.eq.s32.totalorder %s4074_s25, 0 }
  0x13   : > { %s5478_s0 = sld [smem:[#allocation16_spill]] }
  0x14   : > { %p4105_p11 = pnand %p2774_p7, %p316_p8 }
  0x16   : > { %p3819_p12 = pneg %p4105_p11 }
  0x18   : > { %p3820_p13 = pnand %p3827_p10, %p3819_p12 }
  0x19   : > { %s329_s18 = sshll.u32 %s5478_s0, 4  ;;  %s330_s18 = int_to_ptr.vmem [resolvable:$true] %s329_s18 }
  0x1a   : > { %s3869_s19 = scalar_lea.vmem %s330_s18, 16  ;;  %p3871_p1 = pneg %p3820_p13 }
  0x1b   : > { %p3870_p0 = scmp.ne.s32.totalorder %s330_s18, %s3869_s19  ;;  %p3877_p2 = scmp.lt.s32.totalorder %s330_s18, %s330_s18 }
  0x1c   : > { %p3878_p7 = scmp.lt.s32.totalorder %s3869_s19, %s3869_s19 }
  0x1d   : > { %p3872_p3 = pnand %p3871_p1, %p3870_p0 }
  0x1e   : > { %p3879_p8 = por %p3878_p7, %p3877_p2 }
  0x1f   : > { %p3873_p4 = pneg %p3872_p3 }
  0x21   : > { %p3880_p9 = pnand %p3879_p8, %p3873_p4 }
  0x23   : > { %3883 = shalt.err (!%p3880_p9)
}
  0x24   : > { %s3982_s20 = smov [#allocation4]   ;;  %376 = sbr.rel (%p4105_p11) target bundleno = 990 (0x3de), region = 64 }
  0x25   : > { %3822 = dma.vmem_to_smem (!%p3820_p13), %s330_s18, 16, %s3982_s20, [#allocation6]  }
  0x2b   : > { %3955 = dma.done.wait (%p3827_p10), [#allocation6], 16  }
  0x2c   : > { %3957 = vsyncadd (%p3827_p10), [#allocation6], 4294967280 }
  0x2d   : > { %382 = sfence }
  0x2e   : > { %s5466_s26 = sand.u32 1, %s3972_s22   ;;  %p418_p2 = scmp.lt.s32.totalorder %s4074_s25, 7 }
  0x2f   : > { %s4126_s28 = sshll.u32 %s5466_s26, 2  ;;  %s4128_s29 = sld [smem:[#allocation4]] }
  0x30   : > { %s4130_s15 = sld [smem:[#allocation4 + $0x1]]  ;;  %s5479_s1 = sld [smem:[#allocation17_spill]] }
  0x31   : > { %s419_s16 = scalar_select %p418_p2, %s4074_s25, 7 }
  0x32   : > { %p5480_p9 = scmp.ne.s32.totalorder %s4074_s25, 0 }
  0x33   : > { %s2780_s17 = sshll.u32 %s419_s16, 2  ;;  %v428_v0 = vld [vmem:[%s5461_s10] sm:$0xf] (!%p5480_p9)  ;;  %vm429_vm0 = vcmask (!%p5480_p9), 257024   ;;  %v433_v1 = vlaneseq (!%p5480_p9) }
  0x34   : > { %427 = sbr.rel (%p5480_p9) target bundleno = 63 (0x3f), region = 72  ;;  %430 = vst.msk [vmem:[#allocation2] sm:$0xf] (!%p5480_p9), %vm429_vm0, %v428_v0  ;;  %v431_v3 = vld [vmem:[%s5458_s7] sm:$0xff] (!%p5480_p9) }
  0x35   : > { %v434_v2 = vshrl.u32 (!%p5480_p9), %v433_v1, 7 }
  0x36   : > { %s4136_s20 = scalar_lea.vmem %s5479_s1, %s2780_s17 }
  0x37   : > { %v435_v4 = vsub.s32 (!%p5480_p9), 0, %v434_v2  ;;  %v439_v5 = vsub.s32 (!%p5480_p9), 1, %v434_v2  ;;  %v443_v6 = vsub.s32 (!%p5480_p9), 2, %v434_v2  ;;  %v447_v7 = vsub.s32 (!%p5480_p9), 3, %v434_v2 }
  0x38   : > { %v451_v8 = vsub.s32 (!%p5480_p9), 4, %v434_v2  ;;  %v455_v9 = vsub.s32 (!%p5480_p9), 5, %v434_v2  ;;  %v459_v10 = vsub.s32 (!%p5480_p9), 6, %v434_v2  ;;  %v463_v11 = vsub.s32 (!%p5480_p9), 7, %v434_v2 }
  0x39   : > { %v436_v12 = vrot.slane (!%p5480_p9), %v431_v3, %v435_v4  ;;  %v440_v13 = vrot.slane (!%p5480_p9), %v431_v3, %v439_v5  ;;  %v444_v14 = vrot.slane (!%p5480_p9), %v431_v3, %v443_v6  ;;  %v448_v15 = vrot.slane (!%p5480_p9), %v431_v3, %v447_v7 }
  0x3a   : > { %v452_v16 = vrot.slane (!%p5480_p9), %v431_v3, %v451_v8  ;;  %v456_v17 = vrot.slane (!%p5480_p9), %v431_v3, %v455_v9  ;;  %v460_v18 = vrot.slane (!%p5480_p9), %v431_v3, %v459_v10  ;;  %v464_v19 = vrot.slane (!%p5480_p9), %v431_v3, %v463_v11 }
  0x3b   : > { %v465_v20 = vcombine.low %v436_v12, %v440_v13  ;;  %v466_v21 = vcombine.low %v444_v14, %v448_v15 }
  0x3c   : > { %v467_v22 = vcombine.low %v452_v16, %v456_v17  ;;  %v468_v23 = vcombine.low %v460_v18, %v464_v19 }
  0x3d   : > { %473 = vst [vmem:[#allocation3] sm:$0xff] %v465_v20  ;;  %474 = vst [vmem:[#allocation3 + $0x8] sm:$0xff] %v466_v21 }
  0x3e   : > { %475 = vst [vmem:[#allocation3 + $0x10] sm:$0xff] %v467_v22  ;;  %476 = vst [vmem:[#allocation3 + $0x18] sm:$0xff] %v468_v23 }
  0x3f PF: > { %s5481_s2 = sld [smem:[#allocation18_spill]]  ;;  %vm494_vm1 = vcmask 130048   ;;  %v3983_v26 = vmov 0.0|0.0   ;;  %vm708_vm3 = vcmask 261120   ;;  %vm3984_vm4 = vmmov 0   ;;  %v596_v30 = vld [vmem:[%s5457_s6 + $0x80] sm:$0xff] }
  0x40   : > { %3369 = vmatprep.subr.bf16.mxu0 %v3983_v26  ;;  %vm4156_vm2 = vmpackc.low %vm494_vm1, %vm494_vm1  ;;  %v3985_v29 = vmov 0.0   ;;  %v597_v31 = vld [vmem:[%s5457_s6 + $0x88] sm:$0xff]  ;;  %v580_v35 = vld [vmem:[%s5457_s6] sm:$0xff]  ;;  %s2652_s27 = ssub.f32 1.0, %s4128_s29  ;;  %s5486_s30 = scalar_lea.vmem [#allocation7], %s4126_s28  ;;  %vm2658_vm6 = vcmask 257024  }
  0x41   : > { %3355 = vmatprep.mubr.msk.f32.mxu0 %vm3984_vm4, %v3985_v29  ;;  %vm4170_vm5 = vmpackc.low %vm708_vm3, %vm708_vm3  ;;  %v3377_v34 = vpack.c.bf16 %v597_v31, %v596_v30  ;;  %v628_v37 = vld [vmem:[%s5457_s6 + $0x180] sm:$0xff]  ;;  %v581_v38 = vld [vmem:[%s5457_s6 + $0x8] sm:$0xff]  ;;  %s2680_s26 = sshll.u32 %s5486_s30, 4  ;;  %s3986_s16 = smov [#allocation8]   ;;  %s5378_s26 = int_to_ptr.vmem [resolvable:$true] %s2680_s26 }
  0x42   : > { %v629_v39 = vld [vmem:[%s5457_s6 + $0x188] sm:$0xff]  ;;  %v3380_v40 = vpack.c.bf16 %v581_v38, %v580_v35  ;;  %v598_v41 = vld [vmem:[%s5457_s6 + $0x90] sm:$0xff]  ;;  %v599_v42 = vld [vmem:[%s5457_s6 + $0x98] sm:$0xff]  ;;  %s2691_s17 = sshll.u32 %s3986_s16, 4  ;;  %s3884_s19 = scalar_lea.vmem %s5378_s26, 64  ;;  %s5380_s17 = int_to_ptr.vmem [resolvable:$true] %s2691_s17 }
  0x43   : > { %3379 = vmatprep.subr.msk.bf16.mxu1 %vm4170_vm5, %v3377_v34  ;;  %v3383_v43 = vpack.c.bf16 %v599_v42, %v598_v41  ;;  %v3425_v45 = vpack.c.bf16 %v629_v39, %v628_v37  ;;  %v582_v46 = vld [vmem:[%s5457_s6 + $0x10] sm:$0xff]  ;;  %v583_v47 = vld [vmem:[%s5457_s6 + $0x18] sm:$0xff]  ;;  %v600_v48 = vld [vmem:[%s5457_s6 + $0xa0] sm:$0xff]  ;;  %p3885_p10 = scmp.ne.s32.totalorder %s5378_s26, %s3884_s19  ;;  %s3987_s23 = smov [#allocation7]  }
  0x44   : > { %3382 = vmatpush3.bf16.xpose.msk.msra.mxu1 %vm4170_vm5, %v3380_v40  ;;  %v601_v49 = vld [vmem:[%s5457_s6 + $0xa8] sm:$0xff]  ;;  %v3386_v50 = vpack.c.bf16 %v583_v47, %v582_v46  ;;  %v612_v51 = vld [vmem:[%s5457_s6 + $0x100] sm:$0xff]  ;;  %v630_v54 = vld [vmem:[%s5457_s6 + $0x190] sm:$0xff] }
  0x45   : > { %v483_v24 = vld [vmem:[%s5481_s2] sm:$0xff]  ;;  %v484_v25 = vld [vmem:[%s5481_s2 + $0x8] sm:$0xff]  ;;  %v485_v33 = vld [vmem:[%s5481_s2 + $0x10] sm:$0xff]  ;;  %3385 = vmatprep.subr.msk.bf16.mxu1 %vm4170_vm5, %v3383_v43  ;;  %v3389_v53 = vpack.c.bf16 %v601_v49, %v600_v48  ;;  %p3886_p11 = pnand %p3885_p10, %p4093_p5 }
  0x46   : > { %v3370_v27 = vpack.c.bf16 %v484_v25, %v483_v24  ;;  %v486_v36 = vld [vmem:[%s5481_s2 + $0x18] sm:$0xff]  ;;  %v613_v52 = vld [vmem:[%s5457_s6 + $0x108] sm:$0xff]  ;;  %v477_v56 = vld [vmem:[%s4136_s20] sm:$0xf]  ;;  %s1380_s2 = ssub.f32 1.0, %s4130_s15  ;;  %s5488_s20 = sand.u32 1, %s3972_s22  }
  0x47   : > { %v3374_v44 = vpack.c.bf16 %v486_v36, %v485_v33  ;;  %v631_v55 = vld [vmem:[%s5457_s6 + $0x198] sm:$0xff]  ;;  %v3428_v57 = vpack.c.bf16 %v613_v52, %v612_v51  ;;  %v584_v59 = vld [vmem:[%s5457_s6 + $0x20] sm:$0xff]  ;;  %v585_v60 = vld [vmem:[%s5457_s6 + $0x28] sm:$0xff]  ;;  %s2667_s18 = scalar_lea.sflag [#allocation5], %s5488_s20  ;;  %p3887_p12 = pneg %p3886_p11 }
  0x48   : > { %3372 = vmatpush3.bf16.xpose.msk.msra.mxu0 %vm4156_vm2, %v3370_v27  ;;  %v3431_v58 = vpack.c.bf16 %v631_v55, %v630_v54  ;;  %v602_v61 = vld [vmem:[%s5457_s6 + $0xb0] sm:$0xff]  ;;  %v603_v62 = vld [vmem:[%s5457_s6 + $0xb8] sm:$0xff]  ;;  %v3392_v63 = vpack.c.bf16 %v585_v60, %v584_v59  ;;  %v632_v3 = vld [vmem:[%s5457_s6 + $0x1a0] sm:$0xff]  ;;  %v1381_v32 = vstv %s1380_s2  ;;  %s3060_s2 = sshll.u32 %s4074_s25, 6 }
  0x49   : > { %3373 = vmatprep.subr.bf16.mxu0 %v3983_v26  ;;  %v614_v0 = vld [vmem:[%s5457_s6 + $0x110] sm:$0xff]  ;;  %v615_v1 = vld [vmem:[%s5457_s6 + $0x118] sm:$0xff]  ;;  %v3395_v2 = vpack.c.bf16 %v603_v62, %v602_v61  ;;  %v633_v4 = vld [vmem:[%s5457_s6 + $0x1a8] sm:$0xff] }
  0x4a   : > { %v3434_v5 = vpack.c.bf16 %v615_v1, %v614_v0  ;;  %v3437_v6 = vpack.c.bf16 %v633_v4, %v632_v3  ;;  %v586_v7 = vld [vmem:[%s5457_s6 + $0x30] sm:$0xff]  ;;  %v587_v8 = vld [vmem:[%s5457_s6 + $0x38] sm:$0xff]  ;;  %v604_v9 = vld [vmem:[%s5457_s6 + $0xc0] sm:$0xff] }
  0x4b   : > { %v605_v10 = vld [vmem:[%s5457_s6 + $0xc8] sm:$0xff]  ;;  %v3398_v11 = vpack.c.bf16 %v587_v8, %v586_v7  ;;  %v616_v12 = vld [vmem:[%s5457_s6 + $0x120] sm:$0xff]  ;;  %v634_v15 = vld [vmem:[%s5457_s6 + $0x1b0] sm:$0xff] }
  0x4c   : > { %3388 = vmatpush3.bf16.xpose.msk.msra.mxu1 %vm4170_vm5, %v3386_v50  ;;  %v617_v13 = vld [vmem:[%s5457_s6 + $0x128] sm:$0xff]  ;;  %v3401_v14 = vpack.c.bf16 %v605_v10, %v604_v9  ;;  %v635_v16 = vld [vmem:[%s5457_s6 + $0x1b8] sm:$0xff]  ;;  %v588_v19 = vld [vmem:[%s5457_s6 + $0x40] sm:$0xff] }
  0x4d   : > { %3391 = vmatprep.subr.msk.bf16.mxu1 %vm4170_vm5, %v3389_v53  ;;  %v3440_v17 = vpack.c.bf16 %v617_v13, %v616_v12  ;;  %v3443_v18 = vpack.c.bf16 %v635_v16, %v634_v15  ;;  %v589_v20 = vld [vmem:[%s5457_s6 + $0x48] sm:$0xff]  ;;  %v606_v21 = vld [vmem:[%s5457_s6 + $0xd0] sm:$0xff]  ;;  %v607_v22 = vld [vmem:[%s5457_s6 + $0xd8] sm:$0xff] }
  0x4e   : > { %v3404_v23 = vpack.c.bf16 %v589_v20, %v588_v19  ;;  %v618_v24 = vld [vmem:[%s5457_s6 + $0x130] sm:$0xff]  ;;  %v619_v25 = vld [vmem:[%s5457_s6 + $0x138] sm:$0xff]  ;;  %v3407_v27 = vpack.c.bf16 %v607_v22, %v606_v21  ;;  %v636_v28 = vld [vmem:[%s5457_s6 + $0x1c0] sm:$0xff] }
  0x4f   : > { %v637_v30 = vld [vmem:[%s5457_s6 + $0x1c8] sm:$0xff]  ;;  %v3446_v31 = vpack.c.bf16 %v619_v25, %v618_v24  ;;  %v590_v34 = vld [vmem:[%s5457_s6 + $0x50] sm:$0xff]  ;;  %v591_v35 = vld [vmem:[%s5457_s6 + $0x58] sm:$0xff] }
  0x50   : > { %3376 = vmatpush3.bf16.xpose.msk.msra.mxu0 %vm4156_vm2, %v3374_v44  ;;  %v3449_v33 = vpack.c.bf16 %v637_v30, %v636_v28  ;;  %v608_v36 = vld [vmem:[%s5457_s6 + $0xe0] sm:$0xff]  ;;  %v609_v37 = vld [vmem:[%s5457_s6 + $0xe8] sm:$0xff]  ;;  %v3410_v38 = vpack.c.bf16 %v591_v35, %v590_v34  ;;  %v638_v42 = vld [vmem:[%s5457_s6 + $0x1d0] sm:$0xff] }
  0x51   : > { %3427 = vmatprep.subr.msk.bf16.mxu0 %vm4170_vm5, %v3425_v45  ;;  %v620_v39 = vld [vmem:[%s5457_s6 + $0x140] sm:$0xff]  ;;  %v621_v40 = vld [vmem:[%s5457_s6 + $0x148] sm:$0xff]  ;;  %v3413_v41 = vpack.c.bf16 %v609_v37, %v608_v36  ;;  %v639_v43 = vld [vmem:[%s5457_s6 + $0x1d8] sm:$0xff] }
  0x52   : > { %v3452_v44 = vpack.c.bf16 %v621_v40, %v620_v39  ;;  %v3455_v45 = vpack.c.bf16 %v639_v43, %v638_v42  ;;  %v592_v46 = vld [vmem:[%s5457_s6 + $0x60] sm:$0xff]  ;;  %v593_v47 = vld [vmem:[%s5457_s6 + $0x68] sm:$0xff]  ;;  %v610_v48 = vld [vmem:[%s5457_s6 + $0xf0] sm:$0xff] }
  0x53   : > { %v611_v49 = vld [vmem:[%s5457_s6 + $0xf8] sm:$0xff]  ;;  %v3416_v50 = vpack.c.bf16 %v593_v47, %v592_v46  ;;  %v622_v51 = vld [vmem:[%s5457_s6 + $0x150] sm:$0xff]  ;;  %v640_v54 = vld [vmem:[%s5457_s6 + $0x1e0] sm:$0xff] }
  0x54   : > { %3394 = vmatpush3.bf16.xpose.msk.msra.mxu1 %vm4170_vm5, %v3392_v63  ;;  %v623_v52 = vld [vmem:[%s5457_s6 + $0x158] sm:$0xff]  ;;  %v3419_v53 = vpack.c.bf16 %v611_v49, %v610_v48  ;;  %v641_v55 = vld [vmem:[%s5457_s6 + $0x1e8] sm:$0xff]  ;;  %v624_v61 = vld [vmem:[%s5457_s6 + $0x160] sm:$0xff] }
  0x55   : > { %3397 = vmatprep.subr.msk.bf16.mxu1 %vm4170_vm5, %v3395_v2  ;;  %v595_v59 = vld [vmem:[%s5457_s6 + $0x78] sm:$0xff]  ;;  %v625_v62 = vld [vmem:[%s5457_s6 + $0x168] sm:$0xff]  ;;  %v642_v63 = vld [vmem:[%s5457_s6 + $0x1f0] sm:$0xff] }
  0x56   : > { %v643_v0 = vld [vmem:[%s5457_s6 + $0x1f8] sm:$0xff]  ;;  %v3464_v1 = vpack.c.bf16 %v625_v62, %v624_v61  ;;  %v626_v3 = vld [vmem:[%s5457_s6 + $0x170] sm:$0xff]  ;;  %v661_v7 = vld [vmem:[%s5457_s6 + $0x288] sm:$0xff] }
  0x57   : > { %3356 = vmatmul.mubr.msk.f32.vlgmr.msra.gmra.mrb[0].mxu0 %vm494_vm1, %v477_v56  ;;  %v3458_v56 = vpack.c.bf16 %v623_v52, %v622_v51  ;;  %v3467_v2 = vpack.c.bf16 %v643_v0, %v642_v63  ;;  %v627_v4 = vld [vmem:[%s5457_s6 + $0x178] sm:$0xff]  ;;  %v692_v8 = vld [vmem:[%s5457_s6 + $0x380] sm:$0xff]  ;;  %v693_v10 = vld [vmem:[%s5457_s6 + $0x388] sm:$0xff] }
  0x58   : > { %3430 = vmatpush3.bf16.xpose.msk.msra.mxu0 %vm4170_vm5, %v3428_v57  ;;  %v3461_v57 = vpack.c.bf16 %v641_v55, %v640_v54  ;;  %v2783_v12 = vld [vmem:[%s5454_s3] ss:$0 sm:$0xff]  ;;  %v677_v16 = vld [vmem:[%s5457_s6 + $0x308] sm:$0xff]  ;;  %v663_v19 = vld [vmem:[%s5457_s6 + $0x298] sm:$0xff] }
  0x59   : > { %3433 = vmatprep.subr.msk.bf16.mxu0 %vm4170_vm5, %v3431_v58  ;;  %v594_v58 = vld [vmem:[%s5457_s6 + $0x70] sm:$0xff]  ;;  %v644_v13 = vld [vmem:[%s5457_s6 + $0x200] sm:$0xff]  ;;  %v695_v21 = vld [vmem:[%s5457_s6 + $0x398] sm:$0xff] }
  0x5a   : > { %v3422_v60 = vpack.c.bf16 %v595_v59, %v594_v58  ;;  %v676_v15 = vld [vmem:[%s5457_s6 + $0x300] sm:$0xff]  ;;  %v694_v20 = vld [vmem:[%s5457_s6 + $0x390] sm:$0xff]  ;;  %v679_v34 = vld [vmem:[%s5457_s6 + $0x318] sm:$0xff] }
  0x5b   : > { %v3524_v25 = vpack.c.bf16 %v677_v16, %v676_v15  ;;  %v3527_v28 = vpack.c.bf16 %v695_v21, %v694_v20  ;;  %v646_v30 = vld [vmem:[%s5457_s6 + $0x210] sm:$0xff]  ;;  %v664_v35 = vld [vmem:[%s5457_s6 + $0x2a0] sm:$0xff]  ;;  %v665_v36 = vld [vmem:[%s5457_s6 + $0x2a8] sm:$0xff] }
  0x5c   : > { %3400 = vmatpush3.bf16.xpose.msk.msra.mxu1 %vm4170_vm5, %v3398_v11  ;;  %v3521_v11 = vpack.c.bf16 %v693_v10, %v692_v8  ;;  %v696_v37 = vld [vmem:[%s5457_s6 + $0x3a0] sm:$0xff]  ;;  %v681_v46 = vld [vmem:[%s5457_s6 + $0x328] sm:$0xff]  ;;  %v666_v47 = vld [vmem:[%s5457_s6 + $0x2b0] sm:$0xff] }
  0x5d   : > { %3403 = vmatprep.subr.msk.bf16.mxu1 %vm4170_vm5, %v3401_v14  ;;  %v645_v14 = vld [vmem:[%s5457_s6 + $0x208] sm:$0xff]  ;;  %v648_v43 = vld [vmem:[%s5457_s6 + $0x220] sm:$0xff]  ;;  %v667_v48 = vld [vmem:[%s5457_s6 + $0x2b8] sm:$0xff] }
  0x5e   : > { %v3476_v24 = vpack.c.bf16 %v645_v14, %v644_v13  ;;  %v698_v49 = vld [vmem:[%s5457_s6 + $0x3b0] sm:$0xff]  ;;  %v683_v58 = vld [vmem:[%s5457_s6 + $0x338] sm:$0xff]  ;;  %v668_v59 = vld [vmem:[%s5457_s6 + $0x2c0] sm:$0xff] }
  0x5f   : > { %v650_v55 = vld [vmem:[%s5457_s6 + $0x230] sm:$0xff]  ;;  %v700_v61 = vld [vmem:[%s5457_s6 + $0x3c0] sm:$0xff]  ;;  %v701_v62 = vld [vmem:[%s5457_s6 + $0x3c8] sm:$0xff] }
  0x60   : > { %3436 = vmatpush3.bf16.xpose.msk.msra.mxu0 %vm4170_vm5, %v3434_v5  ;;  %v3470_v5 = vpack.c.bf16 %v627_v4, %v626_v3  ;;  %v652_v3 = vld [vmem:[%s5457_s6 + $0x240] sm:$0xff]  ;;  %v653_v4 = vld [vmem:[%s5457_s6 + $0x248] sm:$0xff]  ;;  %v671_v8 = vld [vmem:[%s5457_s6 + $0x2d8] sm:$0xff] }
  0x61   : > { %3439 = vmatprep.subr.msk.bf16.mxu0 %vm4170_vm5, %v3437_v6  ;;  %v660_v6 = vld [vmem:[%s5457_s6 + $0x280] sm:$0xff]  ;;  %v703_v10 = vld [vmem:[%s5457_s6 + $0x3d8] sm:$0xff]  ;;  %v654_v15 = vld [vmem:[%s5457_s6 + $0x250] sm:$0xff] }
  0x62   : > { %v3473_v9 = vpack.c.bf16 %v661_v7, %v660_v6  ;;  %v685_v6 = vld [vmem:[%s5457_s6 + $0x348] sm:$0xff]  ;;  %v670_v7 = vld [vmem:[%s5457_s6 + $0x2d0] sm:$0xff]  ;;  %v655_v16 = vld [vmem:[%s5457_s6 + $0x258] sm:$0xff] }
  0x63   : > { %v3503_v13 = vpack.c.bf16 %v671_v8, %v670_v7  ;;  %v673_v20 = vld [vmem:[%s5457_s6 + $0x2e8] sm:$0xff]  ;;  %v704_v21 = vld [vmem:[%s5457_s6 + $0x3e0] sm:$0xff] }
  0x64   : > { %3406 = vmatpush3.bf16.xpose.msk.msra.mxu1 %vm4170_vm5, %v3404_v23  ;;  %v1435_v7 = vld [vmem:[%s5459_s8 + $0xa0] sm:$0xff]  ;;  %v1436_v8 = vld [vmem:[%s5459_s8 + $0xa8] sm:$0xff] }
  0x65   : > { %3409 = vmatprep.subr.msk.bf16.mxu1 %vm4170_vm5, %v3407_v27 }
  0x68   : > { %3442 = vmatpush3.bf16.xpose.msk.msra.mxu0 %vm4170_vm5, %v3440_v17  ;;  %v662_v17 = vld [vmem:[%s5457_s6 + $0x290] sm:$0xff] }
  0x69   : > { %3445 = vmatprep.subr.msk.bf16.mxu0 %vm4170_vm5, %v3443_v18  ;;  %v3479_v27 = vpack.c.bf16 %v663_v19, %v662_v17  ;;  %v686_v17 = vld [vmem:[%s5457_s6 + $0x350] sm:$0xff]  ;;  %v672_v19 = vld [vmem:[%s5457_s6 + $0x2e0] sm:$0xff] }
  0x6c   : > { %3412 = vmatpush3.bf16.xpose.msk.msra.mxu1 %vm4170_vm5, %v3410_v38  ;;  %v697_v38 = vld [vmem:[%s5457_s6 + $0x3a8] sm:$0xff] }
  0x6d   : > { %3415 = vmatprep.subr.msk.bf16.mxu1 %vm4170_vm5, %v3413_v41  ;;  %v3485_v41 = vpack.c.bf16 %v665_v36, %v664_v35  ;;  %v3533_v42 = vpack.c.bf16 %v697_v38, %v696_v37  ;;  %v674_v35 = vld [vmem:[%s5457_s6 + $0x2f0] sm:$0xff]  ;;  %v675_v36 = vld [vmem:[%s5457_s6 + $0x2f8] sm:$0xff] }
  0x6e   : > { %v706_v37 = vld [vmem:[%s5457_s6 + $0x3f0] sm:$0xff]  ;;  %v707_v38 = vld [vmem:[%s5457_s6 + $0x3f8] sm:$0xff] }
  0x70   : > { %3448 = vmatpush3.bf16.xpose.msk.msra.mxu0 %vm4170_vm5, %v3446_v31  ;;  %v647_v31 = vld [vmem:[%s5457_s6 + $0x218] sm:$0xff] }
  0x71   : > { %3451 = vmatprep.subr.msk.bf16.mxu0 %vm4170_vm5, %v3449_v33  ;;  %v678_v33 = vld [vmem:[%s5457_s6 + $0x310] sm:$0xff]  ;;  %v3482_v39 = vpack.c.bf16 %v647_v31, %v646_v30  ;;  %v656_v30 = vld [vmem:[%s5457_s6 + $0x260] sm:$0xff]  ;;  %v657_v31 = vld [vmem:[%s5457_s6 + $0x268] sm:$0xff] }
  0x72   : > { %v3530_v40 = vpack.c.bf16 %v679_v34, %v678_v33  ;;  %v688_v33 = vld [vmem:[%s5457_s6 + $0x360] sm:$0xff]  ;;  %v689_v34 = vld [vmem:[%s5457_s6 + $0x368] sm:$0xff] }
  0x74   : > { %3418 = vmatpush3.bf16.xpose.msk.msra.mxu1 %vm4170_vm5, %v3416_v50  ;;  %v699_v50 = vld [vmem:[%s5457_s6 + $0x3b8] sm:$0xff] }
  0x75   : > { %3421 = vmatprep.subr.msk.bf16.mxu1 %vm4170_vm5, %v3419_v53  ;;  %v3491_v53 = vpack.c.bf16 %v667_v48, %v666_v47  ;;  %v3539_v54 = vpack.c.bf16 %v699_v50, %v698_v49  ;;  %v1431_v47 = vld [vmem:[%s5459_s8 + $0x80] sm:$0xff]  ;;  %v1432_v48 = vld [vmem:[%s5459_s8 + $0x88] sm:$0xff] }
  0x76   : > { %v1463_v49 = vld [vmem:[%s5459_s8 + $0x180] sm:$0xff]  ;;  %v1464_v50 = vld [vmem:[%s5459_s8 + $0x188] sm:$0xff] }
  0x78   : > { %3454 = vmatpush3.bf16.xpose.msk.msra.mxu0 %vm4170_vm5, %v3452_v44  ;;  %v649_v44 = vld [vmem:[%s5457_s6 + $0x228] sm:$0xff] }
  0x79   : > { %3457 = vmatprep.subr.msk.bf16.mxu0 %vm4170_vm5, %v3455_v45  ;;  %v680_v45 = vld [vmem:[%s5457_s6 + $0x320] sm:$0xff]  ;;  %v3488_v51 = vpack.c.bf16 %v649_v44, %v648_v43  ;;  %v658_v43 = vld [vmem:[%s5457_s6 + $0x270] sm:$0xff]  ;;  %v659_v44 = vld [vmem:[%s5457_s6 + $0x278] sm:$0xff] }
  0x7a   : > { %v3536_v52 = vpack.c.bf16 %v681_v46, %v680_v45  ;;  %v690_v45 = vld [vmem:[%s5457_s6 + $0x370] sm:$0xff]  ;;  %v691_v46 = vld [vmem:[%s5457_s6 + $0x378] sm:$0xff] }
  0x7c   : > { %3424 = vmatpush3.bf16.xpose.msk.msra.mxu1 %vm4170_vm5, %v3422_v60  ;;  %v669_v60 = vld [vmem:[%s5457_s6 + $0x2c8] sm:$0xff] }
  0x7d   : > { %3475 = vmatprep.subr.msk.bf16.mxu1 %vm4170_vm5, %v3473_v9  ;;  %v702_v9 = vld [vmem:[%s5457_s6 + $0x3d0] sm:$0xff] }
  0x7e   : > { %v3551_v14 = vpack.c.bf16 %v703_v10, %v702_v9  ;;  %v1467_v9 = vld [vmem:[%s5459_s8 + $0x1a0] sm:$0xff]  ;;  %v1468_v10 = vld [vmem:[%s5459_s8 + $0x1a8] sm:$0xff] }
  0x80   : > { %3460 = vmatpush3.bf16.xpose.msk.msra.mxu0 %vm4170_vm5, %v3458_v56  ;;  %v651_v56 = vld [vmem:[%s5457_s6 + $0x238] sm:$0xff] }
  0x81   : > { %3463 = vmatprep.subr.msk.bf16.mxu0 %vm4170_vm5, %v3461_v57  ;;  %v682_v57 = vld [vmem:[%s5457_s6 + $0x330] sm:$0xff]  ;;  %v3494_v63 = vpack.c.bf16 %v651_v56, %v650_v55  ;;  %v1415_v55 = vld [vmem:[%s5459_s8] sm:$0xff]  ;;  %v1416_v56 = vld [vmem:[%s5459_s8 + $0x8] sm:$0xff] }
  0x82   : > { %v3542_v0 = vpack.c.bf16 %v683_v58, %v682_v57  ;;  %v1447_v57 = vld [vmem:[%s5459_s8 + $0x100] sm:$0xff]  ;;  %v1448_v58 = vld [vmem:[%s5459_s8 + $0x108] sm:$0xff] }
  0x88   : > { %3466 = vmatpush3.bf16.xpose.msk.msra.mxu0 %vm4170_vm5, %v3464_v1  ;;  %v3497_v1 = vpack.c.bf16 %v669_v60, %v668_v59  ;;  %v1433_v59 = vld [vmem:[%s5459_s8 + $0x90] sm:$0xff]  ;;  %v1434_v60 = vld [vmem:[%s5459_s8 + $0x98] sm:$0xff] }
  0x89   : > { %3469 = vmatprep.subr.msk.bf16.mxu0 %vm4170_vm5, %v3467_v2  ;;  %v3545_v2 = vpack.c.bf16 %v701_v62, %v700_v61  ;;  %v1465_v61 = vld [vmem:[%s5459_s8 + $0x190] sm:$0xff]  ;;  %v1466_v62 = vld [vmem:[%s5459_s8 + $0x198] sm:$0xff] }
  0x90   : > { %3472 = vmatpush3.bf16.xpose.msk.msra.mxu0 %vm4170_vm5, %v3470_v5  ;;  %v684_v5 = vld [vmem:[%s5457_s6 + $0x340] sm:$0xff] }
  0x91   : > { %3523 = vmatprep.subr.msk.bf16.mxu0 %vm4170_vm5, %v3521_v11  ;;  %v3500_v11 = vpack.c.bf16 %v653_v4, %v652_v3  ;;  %v1417_v3 = vld [vmem:[%s5459_s8 + $0x10] sm:$0xff]  ;;  %v1418_v4 = vld [vmem:[%s5459_s8 + $0x18] sm:$0xff] }
 0x12a   : > { %v576_v18 = vpop.f32.mrb[0].mxu0 }
 0x12b   : > { %v4480_v22 = vadd.f32 %v2783_v12, %v576_v18  ;;  %v3357_v23 = vpop.f32.mrb[1].mxu0  ;;  %v3548_v12 = vpack.c.bf16 %v685_v6, %v684_v5  ;;  %v687_v18 = vld [vmem:[%s5457_s6 + $0x358] sm:$0xff]  ;;  %v1449_v5 = vld [vmem:[%s5459_s8 + $0x110] sm:$0xff] }
 0x12c   : > { %v705_v23 = vld [vmem:[%s5457_s6 + $0x3e8] sm:$0xff]  ;;  %v1450_v6 = vld [vmem:[%s5459_s8 + $0x118] sm:$0xff] }
 0x12d   : > { %3102 = vmatprep.mubr.msk.f32.mxu1 %vm708_vm3, %v4480_v22  ;;  %3136 = vmatprep.mubr.msk.f32.mxu0 %vm708_vm3, %v4480_v22 }
 0x12e   : > { %3103 = vmatmul.mubr.msk.f32.vlgmr.msra.gmra.mrb[0].mxu1 %vm708_vm3, %v4480_v22  ;;  %3137 = vmatmul.mubr.msk.f32.vlgmr.msra.gmra.mrb[2].mxu0 %vm708_vm3, %v4480_v22 }
 0x12f   : > { %3478 = vmatpush3.bf16.xpose.msk.msra.mxu1 %vm4170_vm5, %v3476_v24  ;;  %3526 = vmatpush3.bf16.xpose.msk.msra.mxu0 %vm4170_vm5, %v3524_v25  ;;  %v3506_v24 = vpack.c.bf16 %v655_v16, %v654_v15  ;;  %v3554_v25 = vpack.c.bf16 %v687_v18, %v686_v17  ;;  %v1419_v15 = vld [vmem:[%s5459_s8 + $0x20] sm:$0xff]  ;;  %v1420_v16 = vld [vmem:[%s5459_s8 + $0x28] sm:$0xff] }
 0x130   : > { %3170 = vmatprep.mubr.msk.f32.mxu1 %vm708_vm3, %v4480_v22  ;;  %3204 = vmatprep.mubr.msk.f32.mxu0 %vm708_vm3, %v4480_v22  ;;  %v1451_v17 = vld [vmem:[%s5459_s8 + $0x120] sm:$0xff]  ;;  %v1452_v18 = vld [vmem:[%s5459_s8 + $0x128] sm:$0xff] }
 0x131   : > { %3481 = vmatprep.subr.msk.bf16.mxu1 %vm4170_vm5, %v3479_v27  ;;  %3529 = vmatprep.subr.msk.bf16.mxu0 %vm4170_vm5, %v3527_v28  ;;  %v3509_v27 = vpack.c.bf16 %v673_v20, %v672_v19  ;;  %v3557_v28 = vpack.c.bf16 %v705_v23, %v704_v21  ;;  %v1437_v19 = vld [vmem:[%s5459_s8 + $0xb0] sm:$0xff]  ;;  %v1438_v20 = vld [vmem:[%s5459_s8 + $0xb8] sm:$0xff] }
 0x132   : > { %v1469_v21 = vld [vmem:[%s5459_s8 + $0x1b0] sm:$0xff]  ;;  %v1470_v23 = vld [vmem:[%s5459_s8 + $0x1b8] sm:$0xff] }
 0x137   : > { %3484 = vmatpush3.bf16.xpose.msk.msra.mxu1 %vm4170_vm5, %v3482_v39  ;;  %3532 = vmatpush3.bf16.xpose.msk.msra.mxu0 %vm4170_vm5, %v3530_v40  ;;  %v3512_v39 = vpack.c.bf16 %v657_v31, %v656_v30  ;;  %v3560_v40 = vpack.c.bf16 %v689_v34, %v688_v33  ;;  %v1421_v30 = vld [vmem:[%s5459_s8 + $0x30] sm:$0xff]  ;;  %v1422_v31 = vld [vmem:[%s5459_s8 + $0x38] sm:$0xff] }
 0x138   : > { %3487 = vmatprep.subr.msk.bf16.mxu1 %vm4170_vm5, %v3485_v41  ;;  %3535 = vmatprep.subr.msk.bf16.mxu0 %vm4170_vm5, %v3533_v42  ;;  %v3515_v41 = vpack.c.bf16 %v675_v36, %v674_v35  ;;  %v3563_v42 = vpack.c.bf16 %v707_v38, %v706_v37  ;;  %v1453_v33 = vld [vmem:[%s5459_s8 + $0x130] sm:$0xff]  ;;  %v1454_v34 = vld [vmem:[%s5459_s8 + $0x138] sm:$0xff]  ;;  %v1439_v35 = vld [vmem:[%s5459_s8 + $0xc0] sm:$0xff] }
 0x139   : > { %v1440_v36 = vld [vmem:[%s5459_s8 + $0xc8] sm:$0xff]  ;;  %v1471_v37 = vld [vmem:[%s5459_s8 + $0x1c0] sm:$0xff] }
 0x13a   : > { %v1472_v38 = vld [vmem:[%s5459_s8 + $0x1c8] sm:$0xff] }
 0x13f   : > { %3490 = vmatpush3.bf16.xpose.msk.msra.mxu1 %vm4170_vm5, %v3488_v51  ;;  %3538 = vmatpush3.bf16.xpose.msk.msra.mxu0 %vm4170_vm5, %v3536_v52  ;;  %v3518_v51 = vpack.c.bf16 %v659_v44, %v658_v43  ;;  %v3566_v52 = vpack.c.bf16 %v691_v46, %v690_v45  ;;  %v1423_v43 = vld [vmem:[%s5459_s8 + $0x40] sm:$0xff]  ;;  %v1424_v44 = vld [vmem:[%s5459_s8 + $0x48] sm:$0xff] }
 0x140   : > { %3493 = vmatprep.subr.msk.bf16.mxu1 %vm4170_vm5, %v3491_v53  ;;  %3541 = vmatprep.subr.msk.bf16.mxu0 %vm4170_vm5, %v3539_v54  ;;  %v3569_v53 = vpack.c.bf16 %v1432_v48, %v1431_v47  ;;  %v3617_v54 = vpack.c.bf16 %v1464_v50, %v1463_v49  ;;  %v1455_v45 = vld [vmem:[%s5459_s8 + $0x140] sm:$0xff]  ;;  %v1456_v46 = vld [vmem:[%s5459_s8 + $0x148] sm:$0xff]  ;;  %v1441_v47 = vld [vmem:[%s5459_s8 + $0xd0] sm:$0xff] }
 0x141   : > { %v1442_v48 = vld [vmem:[%s5459_s8 + $0xd8] sm:$0xff]  ;;  %v1473_v49 = vld [vmem:[%s5459_s8 + $0x1d0] sm:$0xff] }
 0x142   : > { %v1474_v50 = vld [vmem:[%s5459_s8 + $0x1d8] sm:$0xff] }
 0x147   : > { %3496 = vmatpush3.bf16.xpose.msk.msra.mxu1 %vm4170_vm5, %v3494_v63  ;;  %3544 = vmatpush3.bf16.xpose.msk.msra.mxu0 %vm4170_vm5, %v3542_v0  ;;  %v3572_v63 = vpack.c.bf16 %v1416_v56, %v1415_v55  ;;  %v3620_v0 = vpack.c.bf16 %v1448_v58, %v1447_v57  ;;  %v1425_v55 = vld [vmem:[%s5459_s8 + $0x50] sm:$0xff]  ;;  %v1426_v56 = vld [vmem:[%s5459_s8 + $0x58] sm:$0xff] }
 0x148   : > { %3499 = vmatprep.subr.msk.bf16.mxu1 %vm4170_vm5, %v3497_v1  ;;  %3547 = vmatprep.subr.msk.bf16.mxu0 %vm4170_vm5, %v3545_v2  ;;  %v3575_v1 = vpack.c.bf16 %v1434_v60, %v1433_v59  ;;  %v3623_v2 = vpack.c.bf16 %v1466_v62, %v1465_v61  ;;  %v1457_v57 = vld [vmem:[%s5459_s8 + $0x150] sm:$0xff]  ;;  %v1458_v58 = vld [vmem:[%s5459_s8 + $0x158] sm:$0xff]  ;;  %v1443_v59 = vld [vmem:[%s5459_s8 + $0xe0] sm:$0xff] }
 0x149   : > { %v1444_v60 = vld [vmem:[%s5459_s8 + $0xe8] sm:$0xff]  ;;  %v1475_v61 = vld [vmem:[%s5459_s8 + $0x1e0] sm:$0xff] }
 0x14a   : > { %v1476_v62 = vld [vmem:[%s5459_s8 + $0x1e8] sm:$0xff] }
 0x14f   : > { %3502 = vmatpush3.bf16.xpose.msk.msra.mxu1 %vm4170_vm5, %v3500_v11  ;;  %3550 = vmatpush3.bf16.xpose.msk.msra.mxu0 %vm4170_vm5, %v3548_v12  ;;  %v3578_v11 = vpack.c.bf16 %v1418_v4, %v1417_v3  ;;  %v3626_v12 = vpack.c.bf16 %v1450_v6, %v1449_v5  ;;  %v1427_v3 = vld [vmem:[%s5459_s8 + $0x60] sm:$0xff]  ;;  %v1428_v4 = vld [vmem:[%s5459_s8 + $0x68] sm:$0xff] }
 0x150   : > { %3505 = vmatprep.subr.msk.bf16.mxu1 %vm4170_vm5, %v3503_v13  ;;  %3553 = vmatprep.subr.msk.bf16.mxu0 %vm4170_vm5, %v3551_v14  ;;  %v3581_v13 = vpack.c.bf16 %v1436_v8, %v1435_v7  ;;  %v3629_v14 = vpack.c.bf16 %v1468_v10, %v1467_v9  ;;  %v1459_v5 = vld [vmem:[%s5459_s8 + $0x160] sm:$0xff]  ;;  %v1460_v6 = vld [vmem:[%s5459_s8 + $0x168] sm:$0xff]  ;;  %v1445_v7 = vld [vmem:[%s5459_s8 + $0xf0] sm:$0xff] }
 0x151   : > { %v1446_v8 = vld [vmem:[%s5459_s8 + $0xf8] sm:$0xff]  ;;  %v1477_v9 = vld [vmem:[%s5459_s8 + $0x1f0] sm:$0xff] }
 0x152   : > { %v1478_v10 = vld [vmem:[%s5459_s8 + $0x1f8] sm:$0xff] }
 0x157   : > { %3508 = vmatpush3.bf16.xpose.msk.msra.mxu1 %vm4170_vm5, %v3506_v24  ;;  %3556 = vmatpush3.bf16.xpose.msk.msra.mxu0 %vm4170_vm5, %v3554_v25  ;;  %v3584_v24 = vpack.c.bf16 %v1420_v16, %v1419_v15  ;;  %v3632_v25 = vpack.c.bf16 %v1452_v18, %v1451_v17  ;;  %v1429_v15 = vld [vmem:[%s5459_s8 + $0x70] sm:$0xff]  ;;  %v1430_v16 = vld [vmem:[%s5459_s8 + $0x78] sm:$0xff] }
 0x158   : > { %3511 = vmatprep.subr.msk.bf16.mxu1 %vm4170_vm5, %v3509_v27  ;;  %3559 = vmatprep.subr.msk.bf16.mxu0 %vm4170_vm5, %v3557_v28  ;;  %v3587_v27 = vpack.c.bf16 %v1438_v20, %v1437_v19  ;;  %v3635_v28 = vpack.c.bf16 %v1470_v23, %v1469_v21  ;;  %v1461_v17 = vld [vmem:[%s5459_s8 + $0x170] sm:$0xff]  ;;  %v1462_v18 = vld [vmem:[%s5459_s8 + $0x178] sm:$0xff]  ;;  %v1495_v19 = vld [vmem:[%s5459_s8 + $0x280] sm:$0xff] }
 0x159   : > { %v1496_v20 = vld [vmem:[%s5459_s8 + $0x288] sm:$0xff]  ;;  %v1527_v21 = vld [vmem:[%s5459_s8 + $0x380] sm:$0xff] }
 0x15a   : > { %v1528_v23 = vld [vmem:[%s5459_s8 + $0x388] sm:$0xff] }
 0x15f   : > { %3514 = vmatpush3.bf16.xpose.msk.msra.mxu1 %vm4170_vm5, %v3512_v39  ;;  %3562 = vmatpush3.bf16.xpose.msk.msra.mxu0 %vm4170_vm5, %v3560_v40  ;;  %v3590_v39 = vpack.c.bf16 %v1422_v31, %v1421_v30  ;;  %v3638_v40 = vpack.c.bf16 %v1454_v34, %v1453_v33  ;;  %v1479_v30 = vld [vmem:[%s5459_s8 + $0x200] sm:$0xff]  ;;  %v1480_v31 = vld [vmem:[%s5459_s8 + $0x208] sm:$0xff] }
 0x160   : > { %3517 = vmatprep.subr.msk.bf16.mxu1 %vm4170_vm5, %v3515_v41  ;;  %3565 = vmatprep.subr.msk.bf16.mxu0 %vm4170_vm5, %v3563_v42  ;;  %v3593_v41 = vpack.c.bf16 %v1440_v36, %v1439_v35  ;;  %v3641_v42 = vpack.c.bf16 %v1472_v38, %v1471_v37  ;;  %v1511_v33 = vld [vmem:[%s5459_s8 + $0x300] sm:$0xff]  ;;  %v1512_v34 = vld [vmem:[%s5459_s8 + $0x308] sm:$0xff]  ;;  %v1497_v35 = vld [vmem:[%s5459_s8 + $0x290] sm:$0xff]  ;;  %v3668_v37 = vpack.c.bf16 %v1480_v31, %v1479_v30 }
 0x161   : > { %v1498_v36 = vld [vmem:[%s5459_s8 + $0x298] sm:$0xff]  ;;  %v1529_v38 = vld [vmem:[%s5459_s8 + $0x390] sm:$0xff] }
 0x162   : > { %v1489_v30 = vld [vmem:[%s5459_s8 + $0x250] sm:$0xff]  ;;  %v1490_v31 = vld [vmem:[%s5459_s8 + $0x258] sm:$0xff] }
 0x167   : > { %3520 = vmatpush3.bf16.xpose.msk.msra.mxu1 %vm4170_vm5, %v3518_v51  ;;  %3568 = vmatpush3.bf16.xpose.msk.msra.mxu0 %vm4170_vm5, %v3566_v52  ;;  %v3596_v51 = vpack.c.bf16 %v1424_v44, %v1423_v43  ;;  %v3644_v52 = vpack.c.bf16 %v1456_v46, %v1455_v45  ;;  %v1481_v43 = vld [vmem:[%s5459_s8 + $0x210] sm:$0xff]  ;;  %v1482_v44 = vld [vmem:[%s5459_s8 + $0x218] sm:$0xff] }
 0x168   : > { %3571 = vmatprep.subr.msk.bf16.mxu1 %vm4170_vm5, %v3569_v53  ;;  %3619 = vmatprep.subr.msk.bf16.mxu0 %vm4170_vm5, %v3617_v54  ;;  %v3599_v53 = vpack.c.bf16 %v1442_v48, %v1441_v47  ;;  %v3647_v54 = vpack.c.bf16 %v1474_v50, %v1473_v49  ;;  %v1513_v45 = vld [vmem:[%s5459_s8 + $0x310] sm:$0xff]  ;;  %v1514_v46 = vld [vmem:[%s5459_s8 + $0x318] sm:$0xff]  ;;  %v1499_v47 = vld [vmem:[%s5459_s8 + $0x2a0] sm:$0xff] }
 0x169   : > { %v1500_v48 = vld [vmem:[%s5459_s8 + $0x2a8] sm:$0xff]  ;;  %v1531_v49 = vld [vmem:[%s5459_s8 + $0x3a0] sm:$0xff] }
 0x16a   : > { %v1532_v50 = vld [vmem:[%s5459_s8 + $0x3a8] sm:$0xff] }
 0x16e   : > { %3171 = vmatmul.mubr.msk.f32.vlgmr.msra.gmra.mrb[2].mxu1 %vm708_vm3, %v4480_v22  ;;  %3205 = vmatmul.mubr.msk.f32.vlgmr.msra.gmra.mrb[4].mxu0 %vm708_vm3, %v4480_v22 }
 0x16f   : > { %3574 = vmatpush3.bf16.xpose.msk.msra.mxu1 %vm4170_vm5, %v3572_v63  ;;  %3238 = vmatprep.mubr.msk.f32.mxu1 %vm708_vm3, %v4480_v22  ;;  %v3602_v63 = vpack.c.bf16 %v1426_v56, %v1425_v55  ;;  %v1483_v55 = vld [vmem:[%s5459_s8 + $0x220] sm:$0xff]  ;;  %v1484_v56 = vld [vmem:[%s5459_s8 + $0x228] sm:$0xff] }
 0x170   : > { %3622 = vmatpush3.bf16.xpose.msk.msra.mxu0 %vm4170_vm5, %v3620_v0  ;;  %3272 = vmatprep.mubr.msk.f32.mxu0 %vm708_vm3, %v4480_v22  ;;  %v3650_v0 = vpack.c.bf16 %v1458_v58, %v1457_v57  ;;  %v1515_v57 = vld [vmem:[%s5459_s8 + $0x320] sm:$0xff]  ;;  %v1516_v58 = vld [vmem:[%s5459_s8 + $0x328] sm:$0xff] }
 0x171   : > { %3577 = vmatprep.subr.msk.bf16.mxu1 %vm4170_vm5, %v3575_v1  ;;  %3625 = vmatprep.subr.msk.bf16.mxu0 %vm4170_vm5, %v3623_v2  ;;  %v3605_v1 = vpack.c.bf16 %v1444_v60, %v1443_v59  ;;  %v3653_v2 = vpack.c.bf16 %v1476_v62, %v1475_v61  ;;  %v1501_v59 = vld [vmem:[%s5459_s8 + $0x2b0] sm:$0xff]  ;;  %v1502_v60 = vld [vmem:[%s5459_s8 + $0x2b8] sm:$0xff] }
 0x172   : > { %v1533_v61 = vld [vmem:[%s5459_s8 + $0x3b0] sm:$0xff]  ;;  %v1534_v62 = vld [vmem:[%s5459_s8 + $0x3b8] sm:$0xff] }
 0x177   : > { %3580 = vmatpush3.bf16.xpose.msk.msra.mxu1 %vm4170_vm5, %v3578_v11  ;;  %v3608_v11 = vpack.c.bf16 %v1428_v4, %v1427_v3  ;;  %v1485_v3 = vld [vmem:[%s5459_s8 + $0x230] sm:$0xff]  ;;  %v1486_v4 = vld [vmem:[%s5459_s8 + $0x238] sm:$0xff] }
 0x178   : > { %3628 = vmatpush3.bf16.xpose.msk.msra.mxu0 %vm4170_vm5, %v3626_v12  ;;  %3583 = vmatprep.subr.msk.bf16.mxu1 %vm4170_vm5, %v3581_v13  ;;  %v3656_v12 = vpack.c.bf16 %v1460_v6, %v1459_v5  ;;  %v3611_v13 = vpack.c.bf16 %v1446_v8, %v1445_v7  ;;  %v1517_v5 = vld [vmem:[%s5459_s8 + $0x330] sm:$0xff]  ;;  %v1518_v6 = vld [vmem:[%s5459_s8 + $0x338] sm:$0xff]  ;;  %v1503_v7 = vld [vmem:[%s5459_s8 + $0x2c0] sm:$0xff] }
 0x179   : > { %3631 = vmatprep.subr.msk.bf16.mxu0 %vm4170_vm5, %v3629_v14  ;;  %v3659_v14 = vpack.c.bf16 %v1478_v10, %v1477_v9  ;;  %v1504_v8 = vld [vmem:[%s5459_s8 + $0x2c8] sm:$0xff]  ;;  %v1535_v9 = vld [vmem:[%s5459_s8 + $0x3c0] sm:$0xff] }
 0x17a   : > { %v1536_v10 = vld [vmem:[%s5459_s8 + $0x3c8] sm:$0xff] }
 0x17f   : > { %3586 = vmatpush3.bf16.xpose.msk.msra.mxu1 %vm4170_vm5, %v3584_v24  ;;  %v3614_v24 = vpack.c.bf16 %v1430_v16, %v1429_v15  ;;  %v1487_v15 = vld [vmem:[%s5459_s8 + $0x240] sm:$0xff]  ;;  %v1488_v16 = vld [vmem:[%s5459_s8 + $0x248] sm:$0xff] }
 0x180   : > { %3634 = vmatpush3.bf16.xpose.msk.msra.mxu0 %vm4170_vm5, %v3632_v25  ;;  %3589 = vmatprep.subr.msk.bf16.mxu1 %vm4170_vm5, %v3587_v27  ;;  %v3662_v25 = vpack.c.bf16 %v1462_v18, %v1461_v17  ;;  %v3665_v27 = vpack.c.bf16 %v1496_v20, %v1495_v19  ;;  %v1519_v17 = vld [vmem:[%s5459_s8 + $0x340] sm:$0xff]  ;;  %v1520_v18 = vld [vmem:[%s5459_s8 + $0x348] sm:$0xff]  ;;  %v1505_v19 = vld [vmem:[%s5459_s8 + $0x2d0] sm:$0xff] }
 0x181   : > { %3637 = vmatprep.subr.msk.bf16.mxu0 %vm4170_vm5, %v3635_v28  ;;  %v3713_v28 = vpack.c.bf16 %v1528_v23, %v1527_v21  ;;  %v1506_v20 = vld [vmem:[%s5459_s8 + $0x2d8] sm:$0xff]  ;;  %v1537_v21 = vld [vmem:[%s5459_s8 + $0x3d0] sm:$0xff] }
 0x182   : > { %v1538_v23 = vld [vmem:[%s5459_s8 + $0x3d8] sm:$0xff] }
 0x187   : > { %3592 = vmatpush3.bf16.xpose.msk.msra.mxu1 %vm4170_vm5, %v3590_v39  ;;  %v1530_v39 = vld [vmem:[%s5459_s8 + $0x398] sm:$0xff] }
 0x188   : > { %3640 = vmatpush3.bf16.xpose.msk.msra.mxu0 %vm4170_vm5, %v3638_v40  ;;  %3595 = vmatprep.subr.msk.bf16.mxu1 %vm4170_vm5, %v3593_v41  ;;  %v3716_v40 = vpack.c.bf16 %v1512_v34, %v1511_v33  ;;  %v3671_v41 = vpack.c.bf16 %v1498_v36, %v1497_v35  ;;  %v1521_v33 = vld [vmem:[%s5459_s8 + $0x350] sm:$0xff]  ;;  %v1522_v34 = vld [vmem:[%s5459_s8 + $0x358] sm:$0xff]  ;;  %v1507_v35 = vld [vmem:[%s5459_s8 + $0x2e0] sm:$0xff] }
 0x189   : > { %3643 = vmatprep.subr.msk.bf16.mxu0 %vm4170_vm5, %v3641_v42  ;;  %v3719_v42 = vpack.c.bf16 %v1530_v39, %v1529_v38  ;;  %v1508_v36 = vld [vmem:[%s5459_s8 + $0x2e8] sm:$0xff]  ;;  %v3698_v39 = vpack.c.bf16 %v1490_v31, %v1489_v30  ;;  %v2258_v30 = vld [vmem:[%s5460_s9 + $0xd8] sm:$0xff]  ;;  %v2247_v31 = vld [vmem:[%s5460_s9 + $0x80] sm:$0xff] }
 0x18a   : > { %v1540_v38 = vld [vmem:[%s5459_s8 + $0x3e8] sm:$0xff] }
 0x18f   : > { %3598 = vmatpush3.bf16.xpose.msk.msra.mxu1 %vm4170_vm5, %v3596_v51  ;;  %v3674_v51 = vpack.c.bf16 %v1482_v44, %v1481_v43  ;;  %v1491_v43 = vld [vmem:[%s5459_s8 + $0x260] sm:$0xff]  ;;  %v1492_v44 = vld [vmem:[%s5459_s8 + $0x268] sm:$0xff] }
 0x190   : > { %3646 = vmatpush3.bf16.xpose.msk.msra.mxu0 %vm4170_vm5, %v3644_v52  ;;  %3601 = vmatprep.subr.msk.bf16.mxu1 %vm4170_vm5, %v3599_v53  ;;  %v3722_v52 = vpack.c.bf16 %v1514_v46, %v1513_v45  ;;  %v3677_v53 = vpack.c.bf16 %v1500_v48, %v1499_v47  ;;  %v1523_v45 = vld [vmem:[%s5459_s8 + $0x360] sm:$0xff]  ;;  %v1524_v46 = vld [vmem:[%s5459_s8 + $0x368] sm:$0xff]  ;;  %v1509_v47 = vld [vmem:[%s5459_s8 + $0x2f0] sm:$0xff] }
 0x191   : > { %3649 = vmatprep.subr.msk.bf16.mxu0 %vm4170_vm5, %v3647_v54  ;;  %v3725_v54 = vpack.c.bf16 %v1532_v50, %v1531_v49  ;;  %v1510_v48 = vld [vmem:[%s5459_s8 + $0x2f8] sm:$0xff]  ;;  %v1541_v49 = vld [vmem:[%s5459_s8 + $0x3f0] sm:$0xff] }
 0x192   : > { %v1542_v50 = vld [vmem:[%s5459_s8 + $0x3f8] sm:$0xff] }
 0x197   : > { %3604 = vmatpush3.bf16.xpose.msk.msra.mxu1 %vm4170_vm5, %v3602_v63  ;;  %v3680_v63 = vpack.c.bf16 %v1484_v56, %v1483_v55  ;;  %v1493_v55 = vld [vmem:[%s5459_s8 + $0x270] sm:$0xff]  ;;  %v1494_v56 = vld [vmem:[%s5459_s8 + $0x278] sm:$0xff] }
 0x198   : > { %3652 = vmatpush3.bf16.xpose.msk.msra.mxu0 %vm4170_vm5, %v3650_v0  ;;  %3607 = vmatprep.subr.msk.bf16.mxu1 %vm4170_vm5, %v3605_v1  ;;  %v3728_v0 = vpack.c.bf16 %v1516_v58, %v1515_v57  ;;  %v3683_v1 = vpack.c.bf16 %v1502_v60, %v1501_v59  ;;  %v1525_v57 = vld [vmem:[%s5459_s8 + $0x370] sm:$0xff]  ;;  %v1526_v58 = vld [vmem:[%s5459_s8 + $0x378] sm:$0xff] }
 0x199   : > { %3655 = vmatprep.subr.msk.bf16.mxu0 %vm4170_vm5, %v3653_v2  ;;  %v3731_v2 = vpack.c.bf16 %v1534_v62, %v1533_v61  ;;  %v2234_v59 = vld [vmem:[%s5460_s9 + $0x18] sm:$0xff]  ;;  %v3710_v61 = vpack.c.bf16 %v1494_v56, %v1493_v55  ;;  %v3758_v62 = vpack.c.bf16 %v1526_v58, %v1525_v57 }
 0x19a   : > { %v2242_v60 = vld [vmem:[%s5460_s9 + $0x58] sm:$0xff] }
 0x19f   : > { %3610 = vmatpush3.bf16.xpose.msk.msra.mxu1 %vm4170_vm5, %v3608_v11  ;;  %v3686_v11 = vpack.c.bf16 %v1486_v4, %v1485_v3  ;;  %v2264_v3 = vld [vmem:[%s5455_s4 + $0x8] sm:$0xff] }
 0x1a0   : > { %3658 = vmatpush3.bf16.xpose.msk.msra.mxu0 %vm4170_vm5, %v3656_v12  ;;  %3613 = vmatprep.subr.msk.bf16.mxu1 %vm4170_vm5, %v3611_v13  ;;  %v3734_v12 = vpack.c.bf16 %v1518_v6, %v1517_v5  ;;  %v3689_v13 = vpack.c.bf16 %v1504_v8, %v1503_v7  ;;  %v2265_v6 = vld [vmem:[%s5455_s4 + $0x10] sm:$0xff]  ;;  %v2266_v7 = vld [vmem:[%s5455_s4 + $0x18] sm:$0xff]  ;;  %v2240_v8 = vld [vmem:[%s5460_s9 + $0x48] sm:$0xff] }
 0x1a1   : > { %3661 = vmatprep.subr.msk.bf16.mxu0 %vm4170_vm5, %v3659_v14  ;;  %v3737_v14 = vpack.c.bf16 %v1536_v10, %v1535_v9  ;;  %v3766_v9 = vpack.c.bf16 %v2266_v7, %v2265_v6  ;;  %v2239_v10 = vld [vmem:[%s5460_s9 + $0x40] sm:$0xff] }
 0x1a7   : > { %3616 = vmatpush3.bf16.xpose.msk.msra.mxu1 %vm4170_vm5, %v3614_v24  ;;  %v3692_v24 = vpack.c.bf16 %v1488_v16, %v1487_v15  ;;  %v480_v15 = vld [vmem:[#allocation3 + $0x8] sm:$0xff] }
 0x1a8   : > { %3664 = vmatpush3.bf16.xpose.msk.msra.mxu0 %vm4170_vm5, %v3662_v25  ;;  %3667 = vmatprep.subr.msk.bf16.mxu1 %vm4170_vm5, %v3665_v27  ;;  %v3740_v25 = vpack.c.bf16 %v1520_v18, %v1519_v17  ;;  %v3695_v27 = vpack.c.bf16 %v1506_v20, %v1505_v19  ;;  %v2248_v18 = vld [vmem:[%s5460_s9 + $0x88] sm:$0xff]  ;;  %v2250_v20 = vld [vmem:[%s5460_s9 + $0x98] sm:$0xff] }
 0x1a9   : > { %3715 = vmatprep.subr.msk.bf16.mxu0 %vm4170_vm5, %v3713_v28  ;;  %v3743_v28 = vpack.c.bf16 %v1538_v23, %v1537_v21  ;;  %v2256_v19 = vld [vmem:[%s5460_s9 + $0xc8] sm:$0xff] }
 0x1ae   : > { %3239 = vmatmul.mubr.msk.f32.vlgmr.msra.gmra.mrb[4].mxu1 %vm708_vm3, %v4480_v22 }
 0x1af   : > { %3273 = vmatmul.mubr.msk.f32.vlgmr.msra.gmra.mrb[6].mxu0 %vm708_vm3, %v4480_v22  ;;  %3670 = vmatpush3.bf16.xpose.msk.msra.mxu1 %vm4170_vm5, %v3668_v37  ;;  %v1539_v37 = vld [vmem:[%s5459_s8 + $0x3e0] sm:$0xff] }
 0x1b0   : > { %3306 = vmatprep.mubr.msk.f32.mxu1 %vm708_vm3, %v4480_v22  ;;  %3718 = vmatpush3.bf16.xpose.msk.msra.mxu0 %vm4170_vm5, %v3716_v40  ;;  %v3746_v40 = vpack.c.bf16 %v1522_v34, %v1521_v33  ;;  %v2255_v33 = vld [vmem:[%s5460_s9 + $0xc0] sm:$0xff] }
 0x1b1   : > { %3340 = vmatprep.mubr.msk.f32.mxu0 %vm708_vm3, %v4480_v22  ;;  %3673 = vmatprep.subr.msk.bf16.mxu1 %vm4170_vm5, %v3671_v41  ;;  %v3701_v41 = vpack.c.bf16 %v1508_v36, %v1507_v35  ;;  %v1383_v36 = vmul.f32 %v1381_v32, %v480_v15  ;;  %v2259_v15 = vld [vmem:[%s5460_s9 + $0xe0] sm:$0xff] }
 0x1b2   : > { %3721 = vmatprep.subr.msk.bf16.mxu0 %vm4170_vm5, %v3719_v42  ;;  %v3749_v42 = vpack.c.bf16 %v1540_v38, %v1539_v37  ;;  %v3781_v37 = vpack.c.bf16 %v2258_v30, %v2250_v20  ;;  %v2249_v38 = vld [vmem:[%s5460_s9 + $0x90] sm:$0xff] }
 0x1b3   : > { %v2245_v30 = vld [vmem:[%s5460_s9 + $0x70] sm:$0xff] }
 0x1b7   : > { %3676 = vmatpush3.bf16.xpose.msk.msra.mxu1 %vm4170_vm5, %v3674_v51  ;;  %v3704_v51 = vpack.c.bf16 %v1492_v44, %v1491_v43 }
 0x1b8   : > { %3724 = vmatpush3.bf16.xpose.msk.msra.mxu0 %vm4170_vm5, %v3722_v52  ;;  %3679 = vmatprep.subr.msk.bf16.mxu1 %vm4170_vm5, %v3677_v53  ;;  %v3752_v52 = vpack.c.bf16 %v1524_v46, %v1523_v45  ;;  %v3707_v53 = vpack.c.bf16 %v1510_v48, %v1509_v47  ;;  %v2236_v46 = vld [vmem:[%s5460_s9 + $0x28] sm:$0xff] }
 0x1b9   : > { %3727 = vmatprep.subr.msk.bf16.mxu0 %vm4170_vm5, %v3725_v54  ;;  %v3755_v54 = vpack.c.bf16 %v1542_v50, %v1541_v49  ;;  %v2244_v47 = vld [vmem:[%s5460_s9 + $0x68] sm:$0xff]  ;;  %v481_v49 = vld [vmem:[#allocation3 + $0x10] sm:$0xff]  ;;  %v482_v50 = vld [vmem:[#allocation3 + $0x18] sm:$0xff] }
 0x1ba   : > { %v3785_v48 = vpack.c.bf16 %v2244_v47, %v2236_v46 }
 0x1bf   : > { %3682 = vmatpush3.bf16.xpose.msk.msra.mxu1 %vm4170_vm5, %v3680_v63  ;;  %v3777_v63 = vpack.c.bf16 %v2242_v60, %v2234_v59  ;;  %v1384_v59 = vmul.f32 %v1381_v32, %v481_v49  ;;  %v1385_v60 = vmul.f32 %v1381_v32, %v482_v50 }
 0x1c0   : > { %3730 = vmatpush3.bf16.xpose.msk.msra.mxu0 %vm4170_vm5, %v3728_v0  ;;  %3685 = vmatprep.subr.msk.bf16.mxu1 %vm4170_vm5, %v3683_v1  ;;  %v2233_v0 = vld [vmem:[%s5460_s9 + $0x10] sm:$0xff] }
 0x1c1   : > { %3733 = vmatprep.subr.msk.bf16.mxu0 %vm4170_vm5, %v3731_v2  ;;  %v2241_v1 = vld [vmem:[%s5460_s9 + $0x50] sm:$0xff]  ;;  %v2263_v2 = vld [vmem:[%s5455_s4] sm:$0xff] }
 0x1c2   : > { %v3779_v4 = vpack.c.bf16 %v2241_v1, %v2233_v0  ;;  %v3762_v5 = vpack.c.bf16 %v2264_v3, %v2263_v2 }
 0x1c7   : > { %3688 = vmatpush3.bf16.xpose.msk.msra.mxu1 %vm4170_vm5, %v3686_v11  ;;  %v5287_v11 = vld [vmem:[#allocation2] sm:$0xf] }
 0x1c8   : > { %3736 = vmatpush3.bf16.xpose.msk.msra.mxu0 %vm4170_vm5, %v3734_v12  ;;  %3691 = vmatprep.subr.msk.bf16.mxu1 %vm4170_vm5, %v3689_v13  ;;  %v1386_v13 = vstv %s4130_s15  ;;  %s5376_s15 = scalar_lea.hbm %s5462_s11, %s3060_s2 }
 0x1c9   : > { %3739 = vmatprep.subr.msk.bf16.mxu0 %vm4170_vm5, %v3737_v14  ;;  %v479_v14 = vld [vmem:[#allocation3] sm:$0xff] }
 0x1cf   : > { %3694 = vmatpush3.bf16.xpose.msk.msra.mxu1 %vm4170_vm5, %v3692_v24 }
 0x1d0   : > { %3742 = vmatpush3.bf16.xpose.msk.msra.mxu0 %vm4170_vm5, %v3740_v25  ;;  %3697 = vmatprep.subr.msk.bf16.mxu1 %vm4170_vm5, %v3695_v27  ;;  %v1382_v27 = vmul.f32 %v1381_v32, %v479_v14  ;;  %v2251_v32 = vld [vmem:[%s5460_s9 + $0xa0] sm:$0xff] }
 0x1d1   : > { %3745 = vmatprep.subr.msk.bf16.mxu0 %vm4170_vm5, %v3743_v28  ;;  %v3773_v28 = vpack.c.bf16 %v2256_v19, %v2248_v18  ;;  %v3791_v18 = vpack.c.bf16 %v2259_v15, %v2251_v32 }
 0x1d7   : > { %3700 = vmatpush3.bf16.xpose.msk.msra.mxu1 %vm4170_vm5, %v3698_v39  ;;  %v2257_v39 = vld [vmem:[%s5460_s9 + $0xd0] sm:$0xff] }
 0x1d8   : > { %3748 = vmatpush3.bf16.xpose.msk.msra.mxu0 %vm4170_vm5, %v3746_v40  ;;  %3703 = vmatprep.subr.msk.bf16.mxu1 %vm4170_vm5, %v3701_v41  ;;  %v3775_v40 = vpack.c.bf16 %v2255_v33, %v2247_v31  ;;  %v3783_v41 = vpack.c.bf16 %v2257_v39, %v2249_v38  ;;  %v2254_v33 = vld [vmem:[%s5460_s9 + $0xb8] sm:$0xff] }
 0x1d9   : > { %3751 = vmatprep.subr.msk.bf16.mxu0 %vm4170_vm5, %v3749_v42 }
 0x1df   : > { %3706 = vmatpush3.bf16.xpose.msk.msra.mxu1 %vm4170_vm5, %v3704_v51 }
 0x1e0   : > { %3754 = vmatpush3.bf16.xpose.msk.msra.mxu0 %vm4170_vm5, %v3752_v52  ;;  %3709 = vmatprep.subr.msk.bf16.mxu1 %vm4170_vm5, %v3707_v53 }
 0x1e1   : > { %3757 = vmatprep.subr.msk.bf16.mxu0 %vm4170_vm5, %v3755_v54 }
 0x1e7   : > { %3712 = vmatpush3.bf16.xpose.msk.msra.mxu1 %vm4170_vm5, %v3710_v61 }
 0x1e8   : > { %3760 = vmatpush3.bf16.xpose.msk.msra.mxu0 %vm4170_vm5, %v3758_v62  ;;  %3778 = vmatprep.subr.bf16.mxu1 %v3777_v63 }
 0x1e9   : > { %3761 = vmatprep.subr.bf16.mxu0 %v3983_v26 }
 0x1ee   : > { %3307 = vmatmul.mubr.msk.f32.vlgmr.msra.gmra.mrb[6].mxu1 %vm708_vm3, %v4480_v22 }
 0x1ef   : > { %3341 = vmatmul.mubr.msk.f32.vlgmr.msra.gmra.mrb[8].mxu0 %vm708_vm3, %v4480_v22  ;;  %3780 = vmatpush1.bf16.xpose.msra.mxu1 %v3779_v4  ;;  %v2232_v22 = vld [vmem:[%s5460_s9 + $0x8] sm:$0xff] }
 0x1f0   : > { %3764 = vmatpush3.bf16.xpose.msk.msra.mxu0 %vm4170_vm5, %v3762_v5  ;;  %3366 = vmatprep.mubr.msk.f32.mxu0 %vm3984_vm4, %v3985_v29  ;;  %v3769_v29 = vpack.c.bf16 %v2240_v8, %v2232_v22  ;;  %v2235_v22 = vld [vmem:[%s5460_s9 + $0x20] sm:$0xff] }
 0x1f1   : > { %3765 = vmatprep.subr.bf16.mxu0 %v3983_v26  ;;  %v2231_v26 = vld [vmem:[%s5460_s9] sm:$0xff]  ;;  %3782 = vmatprep.subr.bf16.mxu1 %v3781_v37 }
 0x1f2   : > { %v3771_v12 = vpack.c.bf16 %v2239_v10, %v2231_v26  ;;  %v2243_v8 = vld [vmem:[%s5460_s9 + $0x60] sm:$0xff]  ;;  %v2260_v26 = vld [vmem:[%s5460_s9 + $0xe8] sm:$0xff] }
 0x1f7   : > { %3784 = vmatpush1.bf16.xpose.msra.mxu1 %v3783_v41  ;;  %v2261_v41 = vld [vmem:[%s5460_s9 + $0xf0] sm:$0xff] }
 0x1f8   : > { %3768 = vmatpush3.bf16.xpose.msk.msra.mxu0 %vm4170_vm5, %v3766_v9  ;;  %3786 = vmatprep.subr.bf16.mxu1 %v3785_v48  ;;  %v2653_v48 = vstv %s2652_s27  ;;  %s3888_s27 = sshll.u32 %s3987_s23, 4  ;;  %s3889_s27 = int_to_ptr.vmem [resolvable:$false] %s3888_s27 }
 0x1f9   : > { %3770 = vmatprep.subr.bf16.mxu0 %v3769_v29  ;;  %v2252_v29 = vld [vmem:[%s5460_s9 + $0xa8] sm:$0xff]  ;;  %s3890_s2 = scalar_lea.vmem %s3889_s27, 128  ;;  %p3891_p13 = scmp.lt.s32.totalorder %s5378_s26, %s3889_s27 }
 0x1fa   : > { %v3789_v14 = vpack.c.bf16 %v2260_v26, %v2252_v29  ;;  %p3892_p0 = scmp.lt.s32.totalorder %s3890_s2, %s3884_s19 }
 0x1fc   : > { %p3893_p1 = por %p3892_p0, %p3891_p13 }
 0x1fe   : > { %p3894_p3 = pnand %p3893_p1, %p3887_p12 }
 0x1ff   : > { %3367 = vmatmul.mubr.msk.f32.vlgmr.msra.gmra.mrb[10].mxu0 %vm708_vm3, %v5287_v11 }
 0x200   : > { %3772 = vmatpush1.bf16.xpose.msra.mxu0 %v3771_v12 }
 0x201   : > { %v1162_v16 = vpop.f32.mrb[0].mxu1  ;;  %v1233_v17 = vpop.f32.mrb[2].mxu0  ;;  %3774 = vmatprep.subr.bf16.mxu0 %v3773_v28  ;;  %v2237_v28 = vld [vmem:[%s5460_s9 + $0x30] sm:$0xff] }
 0x202   : > { %v1387_v21 = vmul.f32 %v1386_v13, %v1162_v16  ;;  %v1389_v23 = vmul.f32 %v1386_v13, %v1233_v17  ;;  %v1164_v24 = vpop.f32.mrb[1].mxu1  ;;  %v1235_v25 = vpop.f32.mrb[3].mxu0  ;;  %v2238_v16 = vld [vmem:[%s5460_s9 + $0x38] sm:$0xff]  ;;  %v3795_v37 = vpack.c.bf16 %v2245_v30, %v2237_v28 }
 0x203   : > { %v1388_v34 = vmul.f32 %v1386_v13, %v1164_v24  ;;  %v1390_v35 = vmul.f32 %v1386_v13, %v1235_v25  ;;  %v2246_v17 = vld [vmem:[%s5460_s9 + $0x78] sm:$0xff] }
 0x204   : > { %v3793_v19 = vpack.c.bf16 %v2246_v17, %v2238_v16 }
 0x205   : > { %v1403_v42 = vcombine.low %v1387_v21, %v1388_v34  ;;  %v1404_v43 = vcombine.low %v1389_v23, %v1390_v35  ;;  %v2262_v34 = vld [vmem:[%s5460_s9 + $0xf8] sm:$0xff] }
 0x206   : > { %v3797_v38 = vpack.c.bf16 %v2262_v34, %v2254_v33 }
 0x207   : > { %v1411_v44 = vadd.f32 %v1403_v42, %v1382_v27  ;;  %v1412_v45 = vadd.f32 %v1404_v43, %v1383_v36 }
 0x208   : > { %3776 = vmatpush1.bf16.xpose.msra.mxu0 %v3775_v40  ;;  %v2253_v40 = vld [vmem:[%s5460_s9 + $0xb0] sm:$0xff] }
 0x209   : > { %2660 = vst [vmem:[#allocation3] sm:$0xff] %v1411_v44  ;;  %2661 = vst [vmem:[#allocation3 + $0x8] sm:$0xff] %v1412_v45  ;;  %v3799_v42 = vpack.c.bf16 %v2261_v41, %v2253_v40 }
 0x241   : > { %v1304_v51 = vpop.f32.mrb[2].mxu1  ;;  %v1375_v52 = vpop.f32.mrb[4].mxu0 }
 0x242   : > { %v1391_v53 = vmul.f32 %v1386_v13, %v1304_v51  ;;  %v1393_v54 = vmul.f32 %v1386_v13, %v1375_v52  ;;  %v1306_v55 = vpop.f32.mrb[3].mxu1  ;;  %v1377_v56 = vpop.f32.mrb[5].mxu0  ;;  %v2655_v51 = vstv %s4128_s29  ;;  %s5487_s29 = smov %s5486_s30 }
 0x243   : > { %v1392_v57 = vmul.f32 %v1386_v13, %v1306_v55  ;;  %v1394_v58 = vmul.f32 %v1386_v13, %v1377_v56  ;;  %v3787_v13 = vpack.c.bf16 %v2243_v8, %v2235_v22 }
 0x245   : > { %v1405_v61 = vcombine.low %v1391_v53, %v1392_v57  ;;  %v1406_v62 = vcombine.low %v1393_v54, %v1394_v58  ;;  %v2654_v53 = vmul.f32 %v2653_v48, %v5287_v11 }
 0x247   : > { %v1413_v63 = vadd.f32 %v1405_v61, %v1384_v59  ;;  %v1414_v0 = vadd.f32 %v1406_v62, %v1385_v60 }
 0x249   : > { %2662 = vst [vmem:[#allocation3 + $0x10] sm:$0xff] %v1413_v63  ;;  %2663 = vst [vmem:[#allocation3 + $0x18] sm:$0xff] %v1414_v0 }
 0x281   : > { %v1993_v1 = vpop.f32.mrb[4].mxu1 }
 0x282   : > { %v2064_v2 = vpop.f32.mrb[6].mxu0  ;;  %v1995_v3 = vpop.f32.mrb[5].mxu1 }
 0x283   : > { %v2219_v4 = vcombine.low %v1993_v1, %v1995_v3  ;;  %v2066_v5 = vpop.f32.mrb[7].mxu0 }
 0x284   : > { %v2220_v6 = vcombine.low %v2064_v2, %v2066_v5 }
 0x285   : > { %v2227_v7 = vmul.f32 %v2219_v4, %v1411_v44 }
 0x286   : > { %v2228_v9 = vmul.f32 %v2220_v6, %v1412_v45  ;;  %v3053_v45 = vld [vmem:[%s5456_s5] ss:$0 sm:$0xff] }
 0x287   : > { %v2363_v10 = vcombine.high %v2227_v7, %v2227_v7 }
 0x288   : > { %v2364_v12 = vcombine.high %v2228_v9, %v2228_v9 }
 0x289   : > { %2435 = vmatprep.mubr.f32.mxu0 %v2363_v10 }
 0x28a   : > { %2505 = vmatprep.mubr.f32.mxu1 %v2364_v12  ;;  %2436 = vmatmul.mubr.f32.vlgmr.msra.gmra.mrb[10].mxu0 %v2227_v7 }
 0x28b   : > { %2506 = vmatmul.mubr.f32.vlgmr.msra.gmra.mrb[8].mxu1 %v2228_v9 }
 0x28c   : > { %3788 = vmatpush1.bf16.xpose.msra.mxu1 %v3787_v13 }
 0x28d   : > { %3790 = vmatprep.subr.bf16.mxu1 %v3789_v14 }
 0x294   : > { %3792 = vmatpush1.bf16.xpose.msra.mxu1 %v3791_v18 }
 0x295   : > { %3794 = vmatprep.subr.bf16.mxu1 %v3793_v19 }
 0x2c1   : > { %v2135_v20 = vpop.f32.mrb[6].mxu1 }
 0x2c2   : > { %v2206_v21 = vpop.f32.mrb[8].mxu0  ;;  %v2137_v23 = vpop.f32.mrb[7].mxu1 }
 0x2c3   : > { %v2221_v24 = vcombine.low %v2135_v20, %v2137_v23  ;;  %v2208_v25 = vpop.f32.mrb[9].mxu0 }
 0x2c4   : > { %v2222_v27 = vcombine.low %v2206_v21, %v2208_v25 }
 0x2c5   : > { %v2229_v31 = vmul.f32 %v2221_v24, %v1413_v63 }
 0x2c6   : > { %v2230_v35 = vmul.f32 %v2222_v27, %v1414_v0 }
 0x2c7   : > { %v2365_v36 = vcombine.high %v2229_v31, %v2229_v31 }
 0x2c8   : > { %v2366_v39 = vcombine.high %v2230_v35, %v2230_v35 }
 0x2c9   : > { %2575 = vmatprep.mubr.f32.mxu1 %v2365_v36 }
 0x2ca   : > { %2576 = vmatmul.mubr.f32.vlgmr.msra.gmra.mrb[8].mxu1 %v2229_v31 }
 0x2cb   : > { %3796 = vmatpush1.bf16.xpose.msra.mxu1 %v3795_v37  ;;  %2645 = vmatprep.mubr.f32.mxu1 %v2366_v39 }
 0x2cc   : > { %3798 = vmatprep.subr.bf16.mxu1 %v3797_v38 }
 0x2d3   : > { %3800 = vmatpush1.bf16.xpose.msra.mxu1 %v3799_v42 }
 0x2da   : > { %2646 = vmatmul.mubr.f32.vlgmr.msra.gmra.mrb[8].mxu1 %v2230_v35 }
 0x35d   : > { %v2437_v43 = vpop.f32.mrb[10].mxu0 }
 0x35e   : > { %v2439_v44 = vpop.f32.mrb[11].mxu0  ;;  %v3801_v46 = vadd.f32 %v3053_v45, %v2437_v43 }
 0x3ad   : > { %v2647_v47 = vpop.f32.mrb[8].mxu1 }
 0x3ae   : > { %v3802_v49 = vadd.f32 %v3801_v46, %v2647_v47  ;;  %v2649_v50 = vpop.f32.mrb[9].mxu1 }
 0x3b0   : > { %v2651_v52 = vmax.f32 %v3802_v49, 0.0 }
 0x3b2   : > { %v2656_v54 = vmul.f32 %v2655_v51, %v2651_v52 }
 0x3b4   : > { %v2657_v55 = vadd.f32 %v2656_v54, %v2654_v53 }
 0x3b6   : > { %2659 = vst.msk [vmem:[#allocation2] sm:$0xf] %vm2658_vm6, %v2657_v55  ;;  %2664 = vst.msk [vmem:[%s5487_s29] sm:$0xf] %vm2658_vm6, %v2657_v55 }
 0x3b7   : > { %2665 = vst.msk [vmem:[#allocation8] sm:$0xf] %vm2658_vm6, %v2657_v55 }
 0x3b8   : > { %3897 = shalt.err (!%p3894_p3)
}
 0x3b9   : > { %s3898_s28 = scalar_lea.hbm %s5376_s15, 64  ;;  %s3902_s0 = scalar_lea.hbm %s5462_s11, 512 }
 0x3ba   : > { %p3899_p4 = scmp.ne.s32.totalorder %s5376_s15, %s3898_s28  ;;  %p3903_p2 = scmp.lt.u32.totalorder %s5376_s15, %s5462_s11 }
 0x3bb   : > { %p3904_p9 = scmp.lt.u32.totalorder %s3902_s0, %s3898_s28  ;;  %p3906_p11 = scmp.lt.u32.totalorder %s3898_s28, %s5376_s15 }
 0x3bc   : > { %p3900_p7 = pnand %p3899_p4, %p4093_p5 }
 0x3bd   : > { %p3905_p10 = por %p3904_p9, %p3903_p2 }
 0x3be   : > { %p3901_p8 = pneg %p3900_p7 }
 0x3bf   : > { %p3907_p12 = por %p3906_p11, %p3905_p10 }
 0x3c1   : > { %p3908_p13 = pnand %p3907_p12, %p3901_p8 }
 0x3c3   : > { %3911 = shalt.err (!%p3908_p13)
}
 0x3c4   : > { %3813 = dma.vmem_to_hbm [thread:$0]  (%p4093_p5), %s5378_s26, 64, %s5376_s15, %s2667_s18  }
 0x3c5   : > { %s3912_s20 = scalar_lea.vmem %s5380_s17, 64  ;;  %p5489_p1 = scmp.eq.s32.totalorder %s4074_s25, 7 }
 0x3c6   : > { %p3913_p0 = scmp.ne.s32.totalorder %s5380_s17, %s3912_s20  ;;  %p3919_p7 = scmp.lt.s32.totalorder %s5380_s17, %s5380_s17 }
 0x3c7   : > { %p3920_p2 = scmp.lt.s32.totalorder %s3912_s20, %s3912_s20 }
 0x3c8   : > { %p3914_p3 = pnand %p3913_p0, %p5489_p1 }
 0x3c9   : > { %p3921_p9 = por %p3920_p2, %p3919_p7 }
 0x3ca   : > { %p3915_p4 = pneg %p3914_p3 }
 0x3cc   : > { %p3922_p8 = pnand %p3921_p9, %p3915_p4 }
 0x3ce   : > { %3925 = shalt.err (!%p3922_p8)
}
 0x3cf   : > { %s3926_s23 = scalar_lea.hbm %s5463_s12, 64  ;;  %p5490_p10 = pmov %p5489_p1 }
 0x3d0   : > { %p3927_p5 = scmp.ne.s32.totalorder %s5463_s12, %s3926_s23  ;;  %p3932_p13 = scmp.lt.u32.totalorder %s3926_s23, %s5463_s12 }
 0x3d2   : > { %p3928_p11 = pnand %p3927_p5, %p5490_p10 }
 0x3d4   : > { %p3929_p12 = pneg %p3928_p11 }
 0x3d6   : > { %p3934_p0 = pnand %p3932_p13, %p3929_p12 }
 0x3d8   : > { %3937 = shalt.err (!%p3934_p0)
}
 0x3d9   : > { %3815 = dma.vmem_to_hbm [thread:$0]  (%p5489_p1), %s5380_s17, 64, %s5463_s12, [#allocation9]  }
 0x3da   : > { %p5491_p3 = pmov %p5489_p1 }
 0x3db   : > { %p5492_p4 = pmov %p5489_p1 }
 0x3dc   : > { %3959 = dma.done.wait (%p5491_p3), [#allocation9], 64  }
 0x3dd   : > { %3961 = vsyncadd (%p5492_p4), [#allocation9], 4294967232 }
 0x3de PF: > { %p3831_p7 = scmp.ge.s32.totalorder %s3980_s24, 2  ;;  %s2707_s30 = sand.u32 1, %s3968_s21  }
 0x3df   : > { %s2708_s16 = scalar_lea.sflag [#allocation5], %s2707_s30 }
 0x3e0   : > { %p3824_p2 = pnand %p3831_p7, %p4097_p6 }
 0x3e2   : > { %3963 = dma.done.wait (!%p3824_p2), %s2708_s16, 64  }
 0x3e3   : > { %3965 = vsyncadd (!%p3824_p2), %s2708_s16, 4294967232  ;;  %s5493_s24 = sld [smem:[#allocation14_spill]]  ;;  %s5494_s0 = sld [smem:[#allocation13_spill]] }
 0x3e4   : > { %s5495_s23 = sld [smem:[#allocation15_spill]]  ;;  %s5496_s21 = smov %s3972_s22 }
 0x3e9   : > { %p25_p9 = scmp.ge.s32.totalorder %s5493_s24, 10   ;;  %s5497_s22 = smov %s5494_s0 }
 0x3eb   :  { %27 = sbr.rel (!%p25_p9) target bundleno = 9 (0x9), region = 116 }
 0x3f2   :  { %2713 = vsyncpa [#allocation5], 1 }
 0x3f3   :  { %2715 = vsyncpa [#allocation5 + $0x1], 1 }
 0x3f4   :  { %2716 = vsyncpa [#allocation9], 1 }
 0x3f5   :  { %2717 = vsyncpa [#allocation6], 1 }
 0x3f6   :  { %2719 = vsyncpa [#allocation6 + $0x1], 1 }

</bundles_post_ra>
